<compile_context>
chip_gen: v6e
topology: v6e:2x2x1
jax: 0.10.0
libtpu: 0.0.40
codegen_flags: <defaults>
</compile_context>

<pallas_src>
import jax
import jax.numpy as jnp
from jax.experimental import pallas as pl
from jax.experimental.pallas import tpu as pltpu


def _make_kernel(H, W, Cin, Cmid, Cg, passthrough):
    """passthrough=False: write only the Cg new channels (aliased concat buffer).
    passthrough=True : fallback, write the full (Cin+Cg) block (copies x)."""
    HW = H * W

    def kernel(buf_ref, scale1_ref, bias1_ref, w1_ref, scale2_ref, bias2_ref,
               w2_ref, o_ref):
        # ---- BN1 + ReLU (f32) ----
        x = buf_ref[0].astype(jnp.float32)                       # (Cin, HW)
        r1 = jnp.maximum(x * scale1_ref[...] + bias1_ref[...], 0.0)

        # ---- 1x1 conv on the MXU (bf16 operands, f32 accumulate) ----
        y1 = jnp.dot(w1_ref[...], r1.astype(jnp.bfloat16),
                     preferred_element_type=jnp.float32)         # (Cmid, HW)

        # ---- BN2 + ReLU (f32) ----
        r2 = jnp.maximum(y1 * scale2_ref[...] + bias2_ref[...], 0.0)

        # ---- in-kernel boundary masks (hoisted above the tap loop) ----
        idx = jax.lax.broadcasted_iota(jnp.int32, (1, HW), 1)    # flat index h*W+w
        idx_f = idx.astype(jnp.float32)
        col = idx_f - jnp.floor(idx_f / W) * W                   # exact for HW < 2^24
        row_ok = {-1: idx >= W, 0: None, 1: idx < (H - 1) * W}
        col_ok = {-1: col >= 0.5, 0: None, 1: col <= (W - 2) + 0.5}

        # ---- 3x3 conv as ONE matmul: stack 9 shifted/masked taps along K ----
        taps = []
        for dh in (-1, 0, 1):
            for dw in (-1, 0, 1):
                shift = (-(dh * W + dw)) % HW                    # roll so t[:,i] = r2[:, i+dh*W+dw]
                t = r2 if shift == 0 else pltpu.roll(r2, shift=shift, axis=1)
                m = None
                for cond in (row_ok[dh], col_ok[dw]):
                    if cond is not None:
                        m = cond if m is None else jnp.logical_and(m, cond)
                if m is not None:
                    t = jnp.where(m, t, 0.0)                     # select, dtype-agnostic
                taps.append(t)
        stacked = jnp.concatenate(taps, axis=0).astype(jnp.bfloat16)   # (9*Cmid, HW)
        y2 = jnp.dot(w2_ref[...], stacked,
                     preferred_element_type=jnp.float32)         # (Cg, HW)

        if passthrough:
            o_ref[0, 0:Cin, :] = buf_ref[0]                      # fallback concat
            o_ref[0, Cin:Cin + Cg, :] = y2.astype(o_ref.dtype)
        else:
            o_ref[0] = y2.astype(o_ref.dtype)                    # only new channels

    return kernel


def bottleneck_forward(x_nchw, params):
    (g1, b1, m1, v1, conv1_w, g2, b2, m2, v2, conv2_w) = params
    eps = 1e-5
    s1 = (g1 / jnp.sqrt(v1 + eps)).astype(jnp.float32)
    bb1 = (b1 - m1 * s1).astype(jnp.float32)
    s2 = (g2 / jnp.sqrt(v2 + eps)).astype(jnp.float32)
    bb2 = (b2 - m2 * s2).astype(jnp.float32)

    N, Cin, H, W = x_nchw.shape
    Cmid = conv1_w.shape[0]            # interChannels = 4 * growthRate
    Cg = conv2_w.shape[0]              # growthRate
    Ctot = Cin + Cg
    HW = H * W

    # Free reshape (no transpose); bf16 I/O halves HBM traffic on this mem-bound op.
    x_b = x_nchw.reshape(N, Cin, HW).astype(jnp.bfloat16)

    scale1 = s1.reshape(Cin, 1)
    bias1 = bb1.reshape(Cin, 1)
    scale2 = s2.reshape(Cmid, 1)
    bias2 = bb2.reshape(Cmid, 1)
    w1 = conv1_w.reshape(Cmid, Cin).astype(jnp.bfloat16)
    # (Cg, Cmid, 3, 3) -> (Cg, 3, 3, Cmid) -> (Cg, 9*Cmid); column = tap*Cmid + c,
    # matching the kernel's tap stacking order (tap = (dh+1)*3 + (dw+1)).
    w2 = jnp.transpose(conv2_w, (0, 2, 3, 1)).reshape(Cg, 9 * Cmid).astype(jnp.bfloat16)

    # Aliased (write-only-new-channels) path needs block/offset alignment.
    use_alias = (Cin % Cg == 0) and (Cin % 8 == 0) and (Cg % 8 == 0)
    kernel = _make_kernel(H, W, Cin, Cmid, Cg, passthrough=not use_alias)

    if use_alias:
        # Concat buffer with x already resident in channels [0, Cin).  In a real
        # DenseNet this buffer is preallocated/produced by the previous layer, so
        # the pad below is not an extra pass in practice; the kernel writes only
        # the Cg new channels and aliasing preserves the rest.
        operand0 = jnp.concatenate(
            [x_b, jnp.zeros((N, Cg, HW), jnp.bfloat16)], axis=1)
        out_specs = pl.BlockSpec((1, Cg, HW), lambda n: (n, Cin // Cg, 0))
        io_aliases = {0: 0}
        out_ch = Cg
    else:
        # TODO(synk): misaligned Cin/growthRate -> in-kernel x passthrough fallback
        # (re-writes the old channels; only hit for unusual channel counts).
        operand0 = x_b
        out_specs = pl.BlockSpec((1, Ctot, HW), lambda n: (n, 0, 0))
        io_aliases = {}
        out_ch = Ctot

    in_specs = [
        pl.BlockSpec((1, Cin, HW), lambda n: (n, 0, 0)),   # x (view of concat buffer)
        pl.BlockSpec((Cin, 1), lambda n: (0, 0)),          # bn1 scale  (f32, resident)
        pl.BlockSpec((Cin, 1), lambda n: (0, 0)),          # bn1 bias
        pl.BlockSpec((Cmid, Cin), lambda n: (0, 0)),       # conv1 weight (bf16)
        pl.BlockSpec((Cmid, 1), lambda n: (0, 0)),         # bn2 scale
        pl.BlockSpec((Cmid, 1), lambda n: (0, 0)),         # bn2 bias
        pl.BlockSpec((Cg, 9 * Cmid), lambda n: (0, 0)),    # conv2 weight (bf16)
    ]

    # Advisory cost estimate (per whole call).
    flops = N * (2 * HW * Cin * Cmid + 2 * HW * (9 * Cmid) * Cg
                 + 6 * HW * (Cin + Cmid))
    bytes_accessed = (2 * N * (Cin + out_ch) * HW
                      + 2 * (w1.size + w2.size)
                      + 4 * (2 * Cin + 2 * Cmid))

    # Explicit VMEM budget: double-buffered I/O blocks + resident weights + temps.
    block_bytes = 2 * (Cin * HW * 2 + out_ch * HW * 2)
    weight_bytes = 2 * ((Cmid * Cin + Cg * 9 * Cmid) * 2 + (2 * Cin + 2 * Cmid) * 4)
    temp_bytes = HW * 4 * (Cin + 2 * Cmid + Cg + 9 * Cmid) + HW * 2 * (10 * Cmid)
    vmem_limit = int(min(2 * (block_bytes + weight_bytes + temp_bytes) + (16 << 20),
                         100 << 20))

    out = pl.pallas_call(
        kernel,
        out_shape=jax.ShapeDtypeStruct((N, Ctot, HW), jnp.bfloat16),
        grid=(N,),
        in_specs=in_specs,
        out_specs=out_specs,
        input_output_aliases=io_aliases,
        compiler_params=pltpu.CompilerParams(
            dimension_semantics=("parallel",),
            vmem_limit_bytes=vmem_limit),
        cost_estimate=pl.CostEstimate(
            flops=int(flops), transcendentals=0,
            bytes_accessed=int(bytes_accessed)),
    )(operand0, scale1, bias1, w1, scale2, bias2, w2)

    return out.reshape(N, Ctot, H, W)


def _reference_forward(x, params):
    """Plain-JAX reference reproducing the PyTorch semantics (eval-mode BN)."""
    (g1, b1, m1, v1, conv1_w, g2, b2, m2, v2, conv2_w) = params
    eps = 1e-5
    xn = (x - m1[None, :, None, None]) / jnp.sqrt(v1 + eps)[None, :, None, None]
    r1 = jnp.maximum(xn * g1[None, :, None, None] + b1[None, :, None, None], 0.0)
    y1 = jnp.einsum('nchw,oc->nohw', r1, conv1_w[:, :, 0, 0])
    yn = (y1 - m2[None, :, None, None]) / jnp.sqrt(v2 + eps)[None, :, None, None]
    r2 = jnp.maximum(yn * g2[None, :, None, None] + b2[None, :, None, None], 0.0)
    y2 = jax.lax.conv_general_dilated(
        r2, conv2_w, window_strides=(1, 1), padding=((1, 1), (1, 1)),
        dimension_numbers=('NCHW', 'OIHW', 'NCHW'))
    return jnp.concatenate([x, y2], axis=1)


if __name__ == "__main__":
    key = jax.random.PRNGKey(0)
    # DenseNet-style sizes: nChannels = 2 * growthRate at the first block.
    N, Cin, H, W = 2, 32, 16, 16
    growth = 16
    Cmid = 4 * growth                      # interChannels = 64

    keys = jax.random.split(key, 11)
    x = jax.random.normal(keys[0], (N, Cin, H, W), dtype=jnp.float32)

    g1 = 1.0 + 0.25 * jax.random.normal(keys[1], (Cin,), jnp.float32)
    b1 = 0.1 * jax.random.normal(keys[2], (Cin,), jnp.float32)
    m1 = 0.1 * jax.random.normal(keys[3], (Cin,), jnp.float32)
    v1 = jax.random.uniform(keys[4], (Cin,), jnp.float32, 0.5, 1.5)
    conv1_w = 0.2 * jax.random.normal(keys[5], (Cmid, Cin, 1, 1), jnp.float32)

    g2 = 1.0 + 0.25 * jax.random.normal(keys[6], (Cmid,), jnp.float32)
    b2 = 0.1 * jax.random.normal(keys[7], (Cmid,), jnp.float32)
    m2 = 0.1 * jax.random.normal(keys[8], (Cmid,), jnp.float32)
    v2 = jax.random.uniform(keys[9], (Cmid,), jnp.float32, 0.5, 1.5)
    conv2_w = 0.1 * jax.random.normal(keys[10], (growth, Cmid, 3, 3), jnp.float32)

    params = (g1, b1, m1, v1, conv1_w, g2, b2, m2, v2, conv2_w)

    out = bottleneck_forward(x, params)
    out = jax.block_until_ready(out)
    ref = _reference_forward(x, params)

    assert out.shape == (N, Cin + growth, H, W), out.shape
    # bf16 I/O + bf16 MXU operands (f32 accumulation) => relaxed tolerance vs f32 ref.
    assert jnp.allclose(out.astype(jnp.float32), ref, atol=1.5e-1, rtol=5e-2), \
        float(jnp.max(jnp.abs(out.astype(jnp.float32) - ref)))

    print("KERNEL_OK")
</pallas_src>

<mosaic_0001>
module attributes {stable_mosaic.version = 11 : i64} {
  func.func @kernel(%arg0: i32, %arg1: memref<1x32x256xbf16, #tpu.memory_space<vmem>>, %arg2: memref<32x1xf32, #tpu.memory_space<vmem>>, %arg3: memref<32x1xf32, #tpu.memory_space<vmem>>, %arg4: memref<64x32xbf16, #tpu.memory_space<vmem>>, %arg5: memref<64x1xf32, #tpu.memory_space<vmem>>, %arg6: memref<64x1xf32, #tpu.memory_space<vmem>>, %arg7: memref<16x576xbf16, #tpu.memory_space<vmem>>, %arg8: memref<1x16x256xbf16, #tpu.memory_space<vmem>>) attributes {dimension_semantics = [#tpu.dimension_semantics<parallel>], iteration_bounds = array<i64: 2>, scalar_prefetch = 0 : i64, scratch_operands = 0 : i64, tpu.core_type = #tpu.core_type<tc>, window_params = [{transform_indices = @transform_0, window_bounds = array<i64: 1, 32, 256>}, {pipeline_mode = #tpu.pipeline_mode<synchronous>, transform_indices = @transform_1, window_bounds = array<i64: 32, 1>}, {pipeline_mode = #tpu.pipeline_mode<synchronous>, transform_indices = @transform_2, window_bounds = array<i64: 32, 1>}, {pipeline_mode = #tpu.pipeline_mode<synchronous>, transform_indices = @transform_3, window_bounds = array<i64: 64, 32>}, {pipeline_mode = #tpu.pipeline_mode<synchronous>, transform_indices = @transform_4, window_bounds = array<i64: 64, 1>}, {pipeline_mode = #tpu.pipeline_mode<synchronous>, transform_indices = @transform_5, window_bounds = array<i64: 64, 1>}, {pipeline_mode = #tpu.pipeline_mode<synchronous>, transform_indices = @transform_6, window_bounds = array<i64: 16, 576>}, {transform_indices = @transform_7, window_bounds = array<i64: 1, 16, 256>}]} {
    %c0 = arith.constant 0 : index
    %c0_0 = arith.constant 0 : index
    %c0_1 = arith.constant 0 : index
    %0 = vector.load %arg1[%c0, %c0_0, %c0_1] : memref<1x32x256xbf16, #tpu.memory_space<vmem>>, vector<1x32x256xbf16>
    %1 = vector.shape_cast %0 : vector<1x32x256xbf16> to vector<32x256xbf16>
    %2 = arith.extf %1 : vector<32x256xbf16> to vector<32x256xf32>
    %c0_2 = arith.constant 0 : index
    %c0_3 = arith.constant 0 : index
    %3 = vector.load %arg2[%c0_2, %c0_3] : memref<32x1xf32, #tpu.memory_space<vmem>>, vector<32x1xf32>
    %4 = vector.broadcast %3 : vector<32x1xf32> to vector<32x256xf32>
    %5 = arith.mulf %2, %4 : vector<32x256xf32>
    %c0_4 = arith.constant 0 : index
    %c0_5 = arith.constant 0 : index
    %6 = vector.load %arg3[%c0_4, %c0_5] : memref<32x1xf32, #tpu.memory_space<vmem>>, vector<32x1xf32>
    %7 = vector.broadcast %6 : vector<32x1xf32> to vector<32x256xf32>
    %8 = arith.addf %5, %7 : vector<32x256xf32>
    %cst = arith.constant 0.000000e+00 : f32
    %9 = vector.broadcast %cst : f32 to vector<32x256xf32>
    %10 = arith.maximumf %8, %9 : vector<32x256xf32>
    %c0_6 = arith.constant 0 : index
    %c0_7 = arith.constant 0 : index
    %11 = vector.load %arg4[%c0_6, %c0_7] : memref<64x32xbf16, #tpu.memory_space<vmem>>, vector<64x32xbf16>
    %12 = arith.truncf %10 : vector<32x256xf32> to vector<32x256xbf16>
    %cst_8 = arith.constant dense<0.000000e+00> : vector<64x256xf32>
    %13 = tpu.matmul %11, %12, %cst_8 {dimension_numbers = #tpu.dot_dimension_numbers<[1], [0], [0], [1], [0, 0, 1, 1], [], []>} : vector<64x32xbf16>, vector<32x256xbf16>, vector<64x256xf32> -> vector<64x256xf32>
    %c0_9 = arith.constant 0 : index
    %c0_10 = arith.constant 0 : index
    %14 = vector.load %arg5[%c0_9, %c0_10] : memref<64x1xf32, #tpu.memory_space<vmem>>, vector<64x1xf32>
    %15 = vector.broadcast %14 : vector<64x1xf32> to vector<64x256xf32>
    %16 = arith.mulf %13, %15 : vector<64x256xf32>
    %c0_11 = arith.constant 0 : index
    %c0_12 = arith.constant 0 : index
    %17 = vector.load %arg6[%c0_11, %c0_12] : memref<64x1xf32, #tpu.memory_space<vmem>>, vector<64x1xf32>
    %18 = vector.broadcast %17 : vector<64x1xf32> to vector<64x256xf32>
    %19 = arith.addf %16, %18 : vector<64x256xf32>
    %cst_13 = arith.constant 0.000000e+00 : f32
    %20 = vector.broadcast %cst_13 : f32 to vector<64x256xf32>
    %21 = arith.maximumf %19, %20 : vector<64x256xf32>
    %22 = tpu.iota {dimensions = array<i32: 1>} : vector<1x256xi32>
    %23 = arith.sitofp %22 : vector<1x256xi32> to vector<1x256xf32>
    %cst_14 = arith.constant 1.600000e+01 : f32
    %24 = vector.broadcast %cst_14 : f32 to vector<1x256xf32>
    %25 = arith.divf %23, %24 : vector<1x256xf32>
    %26 = math.floor %25 : vector<1x256xf32>
    %cst_15 = arith.constant 1.600000e+01 : f32
    %27 = vector.broadcast %cst_15 : f32 to vector<1x256xf32>
    %28 = arith.mulf %26, %27 : vector<1x256xf32>
    %29 = arith.subf %23, %28 : vector<1x256xf32>
    %c16_i32 = arith.constant 16 : i32
    %30 = vector.broadcast %c16_i32 : i32 to vector<1x256xi32>
    %31 = arith.cmpi sge, %22, %30 : vector<1x256xi32>
    %c240_i32 = arith.constant 240 : i32
    %32 = vector.broadcast %c240_i32 : i32 to vector<1x256xi32>
    %33 = arith.cmpi slt, %22, %32 : vector<1x256xi32>
    %cst_16 = arith.constant 5.000000e-01 : f32
    %34 = vector.broadcast %cst_16 : f32 to vector<1x256xf32>
    %35 = arith.cmpf oge, %29, %34 : vector<1x256xf32>
    %cst_17 = arith.constant 1.450000e+01 : f32
    %36 = vector.broadcast %cst_17 : f32 to vector<1x256xf32>
    %37 = arith.cmpf ole, %29, %36 : vector<1x256xf32>
    %c17_i32 = arith.constant 17 : i32
    %38 = tpu.dynamic_rotate %21 by %c17_i32 dim 1 : vector<64x256xf32>, i32 -> vector<64x256xf32>
    %39 = arith.andi %31, %35 : vector<1x256xi1>
    %cst_18 = arith.constant 0.000000e+00 : f32
    %40 = vector.shape_cast %39 : vector<1x256xi1> to vector<1x256xi1>
    %41 = vector.broadcast %40 : vector<1x256xi1> to vector<64x256xi1>
    %42 = vector.broadcast %cst_18 : f32 to vector<64x256xf32>
    %43 = arith.select %41, %38, %42 : vector<64x256xi1>, vector<64x256xf32>
    %c16_i32_19 = arith.constant 16 : i32
    %44 = tpu.dynamic_rotate %21 by %c16_i32_19 dim 1 : vector<64x256xf32>, i32 -> vector<64x256xf32>
    %cst_20 = arith.constant 0.000000e+00 : f32
    %45 = vector.shape_cast %31 : vector<1x256xi1> to vector<1x256xi1>
    %46 = vector.broadcast %45 : vector<1x256xi1> to vector<64x256xi1>
    %47 = vector.broadcast %cst_20 : f32 to vector<64x256xf32>
    %48 = arith.select %46, %44, %47 : vector<64x256xi1>, vector<64x256xf32>
    %c15_i32 = arith.constant 15 : i32
    %49 = tpu.dynamic_rotate %21 by %c15_i32 dim 1 : vector<64x256xf32>, i32 -> vector<64x256xf32>
    %50 = arith.andi %31, %37 : vector<1x256xi1>
    %cst_21 = arith.constant 0.000000e+00 : f32
    %51 = vector.shape_cast %50 : vector<1x256xi1> to vector<1x256xi1>
    %52 = vector.broadcast %51 : vector<1x256xi1> to vector<64x256xi1>
    %53 = vector.broadcast %cst_21 : f32 to vector<64x256xf32>
    %54 = arith.select %52, %49, %53 : vector<64x256xi1>, vector<64x256xf32>
    %c1_i32 = arith.constant 1 : i32
    %55 = tpu.dynamic_rotate %21 by %c1_i32 dim 1 : vector<64x256xf32>, i32 -> vector<64x256xf32>
    %cst_22 = arith.constant 0.000000e+00 : f32
    %56 = vector.shape_cast %35 : vector<1x256xi1> to vector<1x256xi1>
    %57 = vector.broadcast %56 : vector<1x256xi1> to vector<64x256xi1>
    %58 = vector.broadcast %cst_22 : f32 to vector<64x256xf32>
    %59 = arith.select %57, %55, %58 : vector<64x256xi1>, vector<64x256xf32>
    %c255_i32 = arith.constant 255 : i32
    %60 = tpu.dynamic_rotate %21 by %c255_i32 dim 1 : vector<64x256xf32>, i32 -> vector<64x256xf32>
    %cst_23 = arith.constant 0.000000e+00 : f32
    %61 = vector.shape_cast %37 : vector<1x256xi1> to vector<1x256xi1>
    %62 = vector.broadcast %61 : vector<1x256xi1> to vector<64x256xi1>
    %63 = vector.broadcast %cst_23 : f32 to vector<64x256xf32>
    %64 = arith.select %62, %60, %63 : vector<64x256xi1>, vector<64x256xf32>
    %c241_i32 = arith.constant 241 : i32
    %65 = tpu.dynamic_rotate %21 by %c241_i32 dim 1 : vector<64x256xf32>, i32 -> vector<64x256xf32>
    %66 = arith.andi %33, %35 : vector<1x256xi1>
    %cst_24 = arith.constant 0.000000e+00 : f32
    %67 = vector.shape_cast %66 : vector<1x256xi1> to vector<1x256xi1>
    %68 = vector.broadcast %67 : vector<1x256xi1> to vector<64x256xi1>
    %69 = vector.broadcast %cst_24 : f32 to vector<64x256xf32>
    %70 = arith.select %68, %65, %69 : vector<64x256xi1>, vector<64x256xf32>
    %c240_i32_25 = arith.constant 240 : i32
    %71 = tpu.dynamic_rotate %21 by %c240_i32_25 dim 1 : vector<64x256xf32>, i32 -> vector<64x256xf32>
    %cst_26 = arith.constant 0.000000e+00 : f32
    %72 = vector.shape_cast %33 : vector<1x256xi1> to vector<1x256xi1>
    %73 = vector.broadcast %72 : vector<1x256xi1> to vector<64x256xi1>
    %74 = vector.broadcast %cst_26 : f32 to vector<64x256xf32>
    %75 = arith.select %73, %71, %74 : vector<64x256xi1>, vector<64x256xf32>
    %c239_i32 = arith.constant 239 : i32
    %76 = tpu.dynamic_rotate %21 by %c239_i32 dim 1 : vector<64x256xf32>, i32 -> vector<64x256xf32>
    %77 = arith.andi %33, %37 : vector<1x256xi1>
    %cst_27 = arith.constant 0.000000e+00 : f32
    %78 = vector.shape_cast %77 : vector<1x256xi1> to vector<1x256xi1>
    %79 = vector.broadcast %78 : vector<1x256xi1> to vector<64x256xi1>
    %80 = vector.broadcast %cst_27 : f32 to vector<64x256xf32>
    %81 = arith.select %79, %76, %80 : vector<64x256xi1>, vector<64x256xf32>
    %82 = tpu.concatenate %43, %48, %54, %59, %21, %64, %70, %75, %81 in 0 : vector<64x256xf32>, vector<64x256xf32>, vector<64x256xf32>, vector<64x256xf32>, vector<64x256xf32>, vector<64x256xf32>, vector<64x256xf32>, vector<64x256xf32>, vector<64x256xf32> -> vector<576x256xf32>
    %83 = arith.truncf %82 : vector<576x256xf32> to vector<576x256xbf16>
    %c0_28 = arith.constant 0 : index
    %c0_29 = arith.constant 0 : index
    %84 = vector.load %arg7[%c0_28, %c0_29] : memref<16x576xbf16, #tpu.memory_space<vmem>>, vector<16x576xbf16>
    %cst_30 = arith.constant dense<0.000000e+00> : vector<16x256xf32>
    %85 = tpu.matmul %84, %83, %cst_30 {dimension_numbers = #tpu.dot_dimension_numbers<[1], [0], [0], [1], [0, 0, 1, 1], [], []>} : vector<16x576xbf16>, vector<576x256xbf16>, vector<16x256xf32> -> vector<16x256xf32>
    %86 = arith.truncf %85 : vector<16x256xf32> to vector<16x256xbf16>
    %c0_31 = arith.constant 0 : index
    %c0_32 = arith.constant 0 : index
    %c0_33 = arith.constant 0 : index
    %87 = vector.load %arg8[%c0_31, %c0_32, %c0_33] : memref<1x16x256xbf16, #tpu.memory_space<vmem>>, vector<1x16x256xbf16>
    %88 = vector.shape_cast %87 : vector<1x16x256xbf16> to vector<16x256xbf16>
    %89 = vector.shape_cast %86 : vector<16x256xbf16> to vector<1x16x256xbf16>
    tpu.vector_store %arg8[%c0_31, %c0_32, %c0_33], %89 {strides = array<i32>} : memref<1x16x256xbf16, #tpu.memory_space<vmem>>, vector<1x16x256xbf16>,
    return
  }
  func.func @transform_0(%arg0: i32) -> (i32, i32, i32) {
    %c0_i32 = arith.constant 0 : i32
    %c0_i32_0 = arith.constant 0 : i32
    %c0_i32_1 = arith.constant 0 : i32
    return %arg0, %c0_i32, %c0_i32_0 : i32, i32, i32
  }
  func.func @transform_1(%arg0: i32) -> (i32, i32) {
    %c0_i32 = arith.constant 0 : i32
    %c0_i32_0 = arith.constant 0 : i32
    %c0_i32_1 = arith.constant 0 : i32
    return %c0_i32, %c0_i32_0 : i32, i32
  }
  func.func @transform_2(%arg0: i32) -> (i32, i32) {
    %c0_i32 = arith.constant 0 : i32
    %c0_i32_0 = arith.constant 0 : i32
    %c0_i32_1 = arith.constant 0 : i32
    return %c0_i32, %c0_i32_0 : i32, i32
  }
  func.func @transform_3(%arg0: i32) -> (i32, i32) {
    %c0_i32 = arith.constant 0 : i32
    %c0_i32_0 = arith.constant 0 : i32
    %c0_i32_1 = arith.constant 0 : i32
    return %c0_i32, %c0_i32_0 : i32, i32
  }
  func.func @transform_4(%arg0: i32) -> (i32, i32) {
    %c0_i32 = arith.constant 0 : i32
    %c0_i32_0 = arith.constant 0 : i32
    %c0_i32_1 = arith.constant 0 : i32
    return %c0_i32, %c0_i32_0 : i32, i32
  }
  func.func @transform_5(%arg0: i32) -> (i32, i32) {
    %c0_i32 = arith.constant 0 : i32
    %c0_i32_0 = arith.constant 0 : i32
    %c0_i32_1 = arith.constant 0 : i32
    return %c0_i32, %c0_i32_0 : i32, i32
  }
  func.func @transform_6(%arg0: i32) -> (i32, i32) {
    %c0_i32 = arith.constant 0 : i32
    %c0_i32_0 = arith.constant 0 : i32
    %c0_i32_1 = arith.constant 0 : i32
    return %c0_i32, %c0_i32_0 : i32, i32
  }
  func.func @transform_7(%arg0: i32) -> (i32, i32, i32) {
    %c2_i32 = arith.constant 2 : i32
    %c0_i32 = arith.constant 0 : i32
    %c0_i32_0 = arith.constant 0 : i32
    return %arg0, %c2_i32, %c0_i32 : i32, i32, i32
  }
}

</mosaic_0001>

<bundles_post_ra>
// kernel: tpu_custom_call.1
= control target key start
LH: loop header
LB: loop body
LE: loop exit
PB: predicated region body
PF: predicated region fallthrough
CT: control target
= control target key end

     0   :  { %12 = vsyncpa [#allocation3], 0  ;;  %s3505_s0 = inlined_call_operand.hbm [shape: bf16[2,48,256], index: 0, kind: input, shape index: {}, may-alias: {0,7}]   ;;  %s3506_s1 = inlined_call_operand.vmem [shape: f32[32,1], index: 1, kind: input, shape index: {}]   ;;  %s3507_s2 = inlined_call_operand.vmem [shape: f32[32,1], index: 2, kind: input, shape index: {}]   ;;  %s3508_s3 = inlined_call_operand.vmem [shape: bf16[64,32], index: 3, kind: input, shape index: {}]   ;;  %s3509_s4 = inlined_call_operand.vmem [shape: f32[64,1], index: 4, kind: input, shape index: {}]   ;;  %s3510_s5 = inlined_call_operand.vmem [shape: f32[64,1], index: 5, kind: input, shape index: {}]   ;;  %s3511_s6 = inlined_call_operand.vmem [shape: bf16[16,576], index: 6, kind: input, shape index: {}]   ;;  %s3512_s7 = inlined_call_operand.hbm [shape: bf16[2,48,256], index: 7, kind: output, shape index: {}, may-alias: {0,7}]  }
   0x1   :  { %14 = vsyncpa [#allocation3 + $0x1], 0 }
   0x2   :  { %15 = vsyncpa [#allocation4], 0 }
   0x3   :  { %17 = vsyncpa [#allocation4 + $0x1], 0  ;;  %s2307_s24 = smov 0   ;;  %s2309_s25 = smov 0  }
   0x4   :  { %s2311_s26 = smov 0   ;;  %s2313_s27 = smov 0  }
   0x5 LB: > { %s2328_s28 = sadd.s32 4294967295, %s2250_s27   ;;  %s1566_s29 = sadd.s32 4294967294, %s2250_s27   ;;  %s2250_s27 = sphi %s2313_s27, %s3575_s27   ;;  %s2246_s26 = sphi %s2311_s26, %s3574_s26   ;;  %s2242_s25 = sphi %s2309_s25, %s3573_s25   ;;  %s2238_s24 = sphi %s2307_s24, %s3572_s24  }
   0x6   : > { %s2332_s30 = sadd.s32 1, %s2250_s27   ;;  %s30_s8 = sadd.s32 1, %s2246_s26 }
   0x7   : > { %s27_s9 = ssub.s32 %s2250_s27, %s2332_s30  ;;  %p37_p0 = scmp.ne.s32.totalorder %s2246_s26, %s2242_s25 }
   0x8   : > { %p28_p1 = scmp.eq.s32.totalorder %s27_s9, 0  ;;  %p38_p2 = scmp.eq.s32.totalorder %s2250_s27, 0 }
   0x9   : > { %p43_p3 = scmp.ne.s32.totalorder %s2242_s25, %s2238_s24  ;;  %p44_p4 = scmp.eq.s32.totalorder %s2328_s28, 0 }
   0xa   : > { %s2344_s10 = scalar_select %p28_p1, %s2246_s26, %s30_s8  }
   0xb   : > { %p2346_p5 = por %p38_p2, %p37_p0  ;;  %p2350_p6 = por %p44_p4, %p43_p3 }
   0xc   : > { %p193_p7 = scmp.eq.s32.totalorder %s2328_s28, 1  ;;  %p199_p8 = scmp.eq.s32.totalorder %s1566_s29, 1 }
   0xd   : > { %s3519_s12 = scalar_select %p2350_p6, 1, 0 }
   0xe   : > { %p1777_p10 = scmp.lt.s32.totalorder %s2250_s27, 2  ;;  %p2357_p11 = por %p193_p7, %p37_p0 }
   0xf   : > { %p2361_p12 = por %p199_p8, %p43_p3  ;;  %s237_s15 = sand.u32 1, %s2246_s26  }
  0x10   : > { %s3520_s13 = scalar_select %p2357_p11, 1, 0 }
  0x11   : > { %s3521_s14 = scalar_select %p2361_p12, 1, 0 }
  0x12   : > { %s1764_s16 = smul.u32 768, %s2250_s27  ;;  %s1569_s17 = sshll.u32 %s237_s15, 5 }
  0x13   : > { %s241_s21 = scalar_lea.vmem [#allocation2], %s1569_s17  ;;  %p2374_p13 = pnand %p1777_p10, %p2346_p5 }
  0x14   : > { %s2370_s20 = scalar_lea.hbm %s3505_s0, %s1764_s16  ;;  %s248_s22 = sshll.u32 %s241_s21, 4  ;;  %s2378_s22 = int_to_ptr.vmem [resolvable:$true] %s248_s22 }
  0x15   : > { %s2380_s29 = scalar_lea.sflag [#allocation3], %s237_s15  ;;  %s2157_s8 = scalar_lea.hbm %s2370_s20, 512 }
  0x16   : > { %p2158_p0 = scmp.ne.s32.totalorder %s2370_s20, %s2157_s8  ;;  %p2159_p1 = pneg %p2374_p13 }
  0x17   : > { %s2162_s17 = scalar_lea.hbm %s3505_s0, 1536  ;;  %p2163_p4 = scmp.lt.s32.totalorder %s2370_s20, %s3505_s0 }
  0x18   : > { %p2160_p2 = pnand %p2159_p1, %p2158_p0  ;;  %p2164_p5 = scmp.lt.s32.totalorder %s2162_s17, %s2157_s8 }
  0x1a   : > { %p2161_p3 = pneg %p2160_p2  ;;  %p2165_p7 = por %p2164_p5, %p2163_p4 }
  0x1c   : > { %p2166_p8 = pnand %p2165_p7, %p2161_p3 }
  0x1e   : > { %2169 = shalt.err (!%p2166_p8)
}
  0x1f   : > { %s2170_s15 = scalar_lea.vmem %s2378_s22, 512  ;;  %s2252_s19 = smov [#allocation2]  }
  0x20   : > { %p2171_p10 = scmp.ne.s32.totalorder %s2378_s22, %s2170_s15  ;;  %s2175_s21 = sshll.u32 %s2252_s19, 4  ;;  %s2176_s21 = int_to_ptr.vmem [resolvable:$false] %s2175_s21 }
  0x21   : > { %s2177_s9 = scalar_lea.vmem %s2176_s21, 1024  ;;  %p2178_p2 = scmp.lt.s32.totalorder %s2378_s22, %s2176_s21 }
  0x22   : > { %p2173_p9 = pnand %p2171_p10, %p2159_p1  ;;  %p2179_p12 = scmp.lt.s32.totalorder %s2177_s9, %s2170_s15 }
  0x24   : > { %p2174_p0 = pneg %p2173_p9  ;;  %p2180_p11 = por %p2179_p12, %p2178_p2 }
  0x26   : > { %p2181_p6 = pnand %p2180_p11, %p2174_p0 }
  0x28   : > { %2184 = shalt.err (!%p2181_p6)
}
  0x29   : > { %s2253_s8 = smov 128   ;;  %s2254_s16 = smov 8  }
  0x2a   : > { %1772 = dma.hbm_to_vmem [thread:$0]  (!%p2374_p13), %s2370_s20, 512, %s2378_s22, %s2380_s29, %s2253_s8, %s2253_s8, %s2254_s16  }
  0x2b   : > { %p1571_p9 = scmp.ge.s32.totalorder %s2250_s27, 1  ;;  %p256_p1 = scmp.lt.s32.totalorder %s2250_s27, 3 }
  0x2d   : > { %p257_p3 = pnand %p1571_p9, %p256_p1 }
  0x2f   : > { %260 = sbr.rel (%p257_p3) target bundleno = 878 (0x36e), region = 48 }
  0x34   : > { %s2404_s17 = sand.u32 1, %s2242_s25   ;;  %p3523_p6 = scmp.ne.s32.totalorder %s3519_s12, 0 }
  0x35   : > { %s1572_s11 = sshll.u32 %s2404_s17, 5  ;;  %s263_s18 = scalar_lea.sflag [#allocation3], %s2404_s17 }
  0x36   : > { %s2408_s15 = scalar_lea.vmem [#allocation2], %s1572_s11 }
  0x37   : > { %2229 = dma.done.wait (%p3523_p6), %s263_s18, 512  }
  0x38   : > { %2231 = vsyncadd (%p3523_p6), %s263_s18, 4294966784  ;;  %v3515_v0 = vmov 0   ;;  %v344_v1 = vld [vmem:[%s3507_s2 + $0x10] sm:$0xff]  ;;  %v345_v3 = vld [vmem:[%s3507_s2 + $0x18] sm:$0xff]  ;;  %vm414_vm0 = vcmask 261120   ;;  %s2256_s9 = smov 16  }
  0x39   : > { %1825 = vset.pattern.permute.xlu1 %v3515_v0  ;;  %1824 = vset.pattern.permute.xlu0 %v3515_v0  ;;  %v312_v2 = vld [vmem:[%s3506_s1 + $0x10] sm:$0xff]  ;;  %v313_v4 = vld [vmem:[%s3506_s1 + $0x18] sm:$0xff]  ;;  %v311_v5 = vld [vmem:[%s3506_s1 + $0x8] sm:$0xff]  ;;  %s2257_s8 = smov 127   ;;  %s2258_s16 = smov 17  }
  0x3a   : > { %459 = vmatprep.mubr.bf16.mxu0 %v3515_v0  ;;  %358 = vperm.xlu1 %1825, %v344_v1   ;;  %v310_v6 = vld [vmem:[%s3506_s1] sm:$0xff]  ;;  %v343_v7 = vld [vmem:[%s3507_s2 + $0x8] sm:$0xff]  ;;  %v507_v9 = vld [vmem:[%s3509_s4 + $0x38] sm:$0xff]  ;;  %s2259_s11 = smov 1   ;;  %s2260_s18 = smov 112  }
  0x3b   : > { %326 = vperm.xlu0 %1824, %v312_v2   ;;  %v342_v8 = vld [vmem:[%s3507_s2] sm:$0xff]  ;;  %v506_v10 = vld [vmem:[%s3509_s4 + $0x30] sm:$0xff]  ;;  %v571_v11 = vld [vmem:[%s3510_s5 + $0x38] sm:$0xff]  ;;  %s2262_s20 = smov 113   ;;  %s2263_s22 = smov 111  }
  0x3c   : > { %v570_v12 = vld [vmem:[%s3510_s5 + $0x30] sm:$0xff]  ;;  %v505_v13 = vld [vmem:[%s3509_s4 + $0x28] sm:$0xff]  ;;  %v504_v14 = vld [vmem:[%s3509_s4 + $0x20] sm:$0xff]  ;;  %s1477_s21 = scalar_lea.sflag [#allocation4], %s2404_s17  ;;  %p3569_p12 = scmp.ne.s32.totalorder %s3520_s13, 0 }
  0x3d   : > { %v569_v15 = vld [vmem:[%s3510_s5 + $0x28] sm:$0xff]  ;;  %v568_v16 = vld [vmem:[%s3510_s5 + $0x20] sm:$0xff]  ;;  %v503_v17 = vld [vmem:[%s3509_s4 + $0x18] sm:$0xff] }
  0x3e   : > { %363 = vperm.xlu1 %1825, %v345_v3   ;;  %v502_v18 = vld [vmem:[%s3509_s4 + $0x10] sm:$0xff]  ;;  %v567_v19 = vld [vmem:[%s3510_s5 + $0x18] sm:$0xff]  ;;  %v501_v21 = vld [vmem:[%s3509_s4 + $0x8] sm:$0xff] }
  0x3f   : > { %331 = vperm.xlu0 %1824, %v313_v4   ;;  %v566_v20 = vld [vmem:[%s3510_s5 + $0x10] sm:$0xff]  ;;  %v500_v22 = vld [vmem:[%s3509_s4] sm:$0xff]  ;;  %v565_v23 = vld [vmem:[%s3510_s5 + $0x8] sm:$0xff] }
  0x40   : > { %v564_v24 = vld [vmem:[%s3510_s5] sm:$0xff]  ;;  %v300_v25 = vld [vmem:[%s2408_s15 + $0x10] sm:$0xff]  ;;  %v301_v28 = vld [vmem:[%s2408_s15 + $0x18] sm:$0xff] }
  0x41   : > { %v306_v26 = vunpack.c.l.bf16 %v300_v25  ;;  %v307_v27 = vunpack.c.h.bf16 %v300_v25  ;;  %v308_v31 = vunpack.c.l.bf16 %v301_v28  ;;  %v309_v32 = vunpack.c.h.bf16 %v301_v28  ;;  %v299_v35 = vld [vmem:[%s2408_s15 + $0x8] sm:$0xff]  ;;  %v298_v38 = vld [vmem:[%s2408_s15] sm:$0xff]  ;;  %s2261_s15 = smov 15  }
  0x42   : > { %321 = vperm.xlu1 %1825, %v311_v5   ;;  %v304_v42 = vunpack.c.l.bf16 %v299_v35  ;;  %v305_v43 = vunpack.c.h.bf16 %v299_v35  ;;  %v302_v46 = vunpack.c.l.bf16 %v298_v38  ;;  %v303_v47 = vunpack.c.h.bf16 %v298_v38 }
  0x43   : > { %316 = vperm.xlu0 %1824, %v310_v6  }
  0x46   : > { %353 = vperm.xlu1 %1825, %v343_v7  }
  0x47   : > { %348 = vperm.xlu0 %1824, %v342_v8  }
  0x4a   : > { %545 = vperm.xlu1 %1825, %v507_v9  }
  0x4b   : > { %540 = vperm.xlu0 %1824, %v506_v10   ;;  %v2146_v10 = vld [vmem:[%s3508_s3] sm:$0xff]  }
  0x4e   : > { %609 = vperm.xlu1 %1825, %v571_v11   ;;  %v2147_v11 = vld [vmem:[%s3508_s3 + $0x8] sm:$0xff]  }
  0x4f   : > { %604 = vperm.xlu0 %1824, %v570_v12   ;;  %v2148_v12 = vld [vmem:[%s3508_s3 + $0x10] sm:$0xff]  }
  0x52   : > { %535 = vperm.xlu1 %1825, %v505_v13   ;;  %v2149_v13 = vld [vmem:[%s3508_s3 + $0x18] sm:$0xff]  }
  0x53   : > { %530 = vperm.xlu0 %1824, %v504_v14  }
  0x56   : > { %599 = vperm.xlu1 %1825, %v569_v15  }
  0x57   : > { %594 = vperm.xlu0 %1824, %v568_v16  }
  0x5a   : > { %525 = vperm.xlu1 %1825, %v503_v17  }
  0x5b   : > { %520 = vperm.xlu0 %1824, %v502_v18  }
  0x5e   : > { %589 = vperm.xlu1 %1825, %v567_v19  }
  0x5f   : > { %584 = vperm.xlu0 %1824, %v566_v20  }
  0x62   : > { %515 = vperm.xlu1 %1825, %v501_v21  }
  0x63   : > { %510 = vperm.xlu0 %1824, %v500_v22  }
  0x66   : > { %579 = vperm.xlu1 %1825, %v565_v23  }
  0x67   : > { %574 = vperm.xlu0 %1824, %v564_v24  }
  0xb5   : > { %v359_v29 = vpop.permute.xlu1 %358 }
  0xb6   : > { %v327_v30 = vpop.permute.xlu0 %326 }
  0xb7   : > { %v338_v33 = vmul.f32 %v327_v30, %v306_v26  ;;  %v339_v34 = vmul.f32 %v327_v30, %v307_v27 }
  0xb9   : > { %v364_v36 = vpop.permute.xlu1 %363  ;;  %v370_v41 = vadd.f32 %v359_v29, %v338_v33  ;;  %v371_v44 = vadd.f32 %v359_v29, %v339_v34 }
  0xba   : > { %v332_v37 = vpop.permute.xlu0 %331 }
  0xbb   : > { %v340_v39 = vmul.f32 %v332_v37, %v308_v31  ;;  %v341_v40 = vmul.f32 %v332_v37, %v309_v32  ;;  %v379_v51 = vmax.f32 %v371_v44, 0.0  ;;  %v378_v53 = vmax.f32 %v370_v41, 0.0 }
  0xbd   : > { %v372_v45 = vadd.f32 %v364_v36, %v340_v39  ;;  %v373_v48 = vadd.f32 %v364_v36, %v341_v40  ;;  %v322_v49 = vpop.permute.xlu1 %321 }
  0xbe   : > { %v317_v50 = vpop.permute.xlu0 %316  ;;  %v336_v55 = vmul.f32 %v322_v49, %v304_v42  ;;  %v337_v56 = vmul.f32 %v322_v49, %v305_v43 }
  0xbf   : > { %v381_v52 = vmax.f32 %v373_v48, 0.0  ;;  %v380_v54 = vmax.f32 %v372_v45, 0.0  ;;  %v334_v57 = vmul.f32 %v317_v50, %v302_v46  ;;  %v335_v58 = vmul.f32 %v317_v50, %v303_v47 }
  0xc1   : > { %v354_v59 = vpop.permute.xlu1 %353  ;;  %v393_v61 = vpack.c.bf16 %v381_v52, %v379_v51  ;;  %v392_v62 = vpack.c.bf16 %v380_v54, %v378_v53 }
  0xc2   : > { %v349_v60 = vpop.permute.xlu0 %348  ;;  %v368_v63 = vadd.f32 %v354_v59, %v336_v55  ;;  %v369_v1 = vadd.f32 %v354_v59, %v337_v56 }
  0xc3   : > { %v366_v2 = vadd.f32 %v349_v60, %v334_v57  ;;  %v367_v3 = vadd.f32 %v349_v60, %v335_v58  ;;  %439 = vmatprep.subr.bf16.mxu0 %v393_v61 }
  0xc4   : > { %v376_v4 = vmax.f32 %v368_v63, 0.0  ;;  %v377_v5 = vmax.f32 %v369_v1, 0.0  ;;  %440 = vmatpush1.bf16.msra.mxu0 %v392_v62 }
  0xc5   : > { %v374_v6 = vmax.f32 %v366_v2, 0.0  ;;  %v375_v7 = vmax.f32 %v367_v3, 0.0  ;;  %v2510_v15 = vpop.permute.xlu1 %545 }
  0xc6   : > { %v2508_v14 = vpop.permute.xlu0 %540 }
  0xc7   : > { %v391_v8 = vpack.c.bf16 %v377_v5, %v375_v7  ;;  %v390_v9 = vpack.c.bf16 %v376_v4, %v374_v6 }
  0xc9   : > { %441 = vmatprep.subr.bf16.mxu0 %v391_v8  ;;  %v2514_v17 = vpop.permute.xlu1 %609 }
  0xca   : > { %442 = vmatpush1.bf16.msra.mxu0 %v390_v9  ;;  %v2512_v16 = vpop.permute.xlu0 %604 }
  0xcd   : > { %1578 = vmatmul.mubr.msk.bf16.vlgmr.msra.gmra.mxu0 %vm414_vm0, %v2146_v10  ;;  %v2516_v19 = vpop.permute.xlu1 %535 }
  0xce   : > { %469 = vmatprep.mubr.bf16.mxu0 %v3515_v0  ;;  %v531_v18 = vpop.permute.xlu0 %530 }
  0xd1   : > { %v2520_v21 = vpop.permute.xlu1 %599 }
  0xd2   : > { %v2518_v20 = vpop.permute.xlu0 %594 }
  0xd5   : > { %1579 = vmatmul.mubr.msk.bf16.gmra.mxu0 %vm414_vm0, %v2147_v11  ;;  %v526_v23 = vpop.permute.xlu1 %525 }
  0xd6   : > { %479 = vmatprep.mubr.bf16.mxu0 %v3515_v0  ;;  %v521_v22 = vpop.permute.xlu0 %520 }
  0xd9   : > { %v590_v25 = vpop.permute.xlu1 %589 }
  0xda   : > { %v585_v24 = vpop.permute.xlu0 %584 }
  0xdd   : > { %1580 = vmatmul.mubr.msk.bf16.gmra.mxu0 %vm414_vm0, %v2148_v12  ;;  %v516_v27 = vpop.permute.xlu1 %515 }
  0xde   : > { %489 = vmatprep.mubr.bf16.mxu0 %v3515_v0  ;;  %v511_v26 = vpop.permute.xlu0 %510 }
  0xe1   : > { %v580_v36 = vpop.permute.xlu1 %579 }
  0xe2   : > { %v575_v32 = vpop.permute.xlu0 %574 }
  0xe5   : > { %1581 = vmatmul.mubr.msk.bf16.gmra.mxu0 %vm414_vm0, %v2149_v13 }
 0x18d   : > { %v461_v28 = vpop.f32.mrf.mxu0 }
 0x18e   : > { %v548_v29 = vmul.f32 %v511_v26, %v461_v28 }
 0x18f   : > { %v463_v30 = vpop.f32.mrf.mxu0 }
 0x190   : > { %v549_v31 = vmul.f32 %v511_v26, %v463_v30  ;;  %v612_v34 = vadd.f32 %v575_v32, %v548_v29 }
 0x191   : > { %v465_v33 = vpop.f32.mrf.mxu0 }
 0x192   : > { %v550_v35 = vmul.f32 %v516_v27, %v465_v33  ;;  %v613_v38 = vadd.f32 %v575_v32, %v549_v31  ;;  %v628_v42 = vmax.f32 %v612_v34, 0.0 }
 0x193   : > { %v467_v37 = vpop.f32.mrf.mxu0 }
 0x194   : > { %v614_v39 = vadd.f32 %v580_v36, %v550_v35  ;;  %v551_v40 = vmul.f32 %v516_v27, %v467_v37  ;;  %v629_v47 = vmax.f32 %v613_v38, 0.0 }
 0x195   : > { %v471_v41 = vpop.f32.mrf.mxu0 }
 0x196   : > { %v630_v43 = vmax.f32 %v614_v39, 0.0  ;;  %v615_v44 = vadd.f32 %v580_v36, %v551_v40  ;;  %v552_v45 = vmul.f32 %v521_v22, %v471_v41 }
 0x197   : > { %v473_v46 = vpop.f32.mrf.mxu0 }
 0x198   : > { %v631_v48 = vmax.f32 %v615_v44, 0.0  ;;  %v2522_v49 = vpack.i.bf16 %v630_v43, %v628_v42  ;;  %v616_v53 = vadd.f32 %v585_v24, %v552_v45  ;;  %v553_v54 = vmul.f32 %v521_v22, %v473_v46 }
 0x199   : > { %v475_v50 = vpop.f32.mrf.mxu0  ;;  %v2534_v2 = vpack.c.bf16 %v630_v43, %v628_v42 }
 0x19a   : > { %v554_v51 = vmul.f32 %v526_v23, %v475_v50  ;;  %1827 = vrot.lane.b32.xlu0 %v2522_v49, %s2256_s9  ;;  %v2526_v52 = vpack.i.bf16 %v631_v48, %v629_v47  ;;  %v632_v61 = vmax.f32 %v616_v53, 0.0  ;;  %v617_v62 = vadd.f32 %v585_v24, %v553_v54  ;;  %v2155_v53 = vld [vmem:[%s3511_s6 + $0xc] ss:$20 sps:$4 sm:$0xff]  }
 0x19b   : > { %v477_v55 = vpop.f32.mrf.mxu0  ;;  %v2532_v1 = vpack.c.bf16 %v631_v48, %v629_v47  ;;  %v2152_v47 = vld [vmem:[%s3511_s6 + $0x4] ss:$20 sps:$4 sm:$0xff]   ;;  %v644_v50 = vlaneseq  ;;  %1408 = vmatprep.mubr.bf16.mxu0 %v2155_v53 }
 0x19c   : > { %v618_v56 = vadd.f32 %v590_v25, %v554_v51  ;;  %v555_v57 = vmul.f32 %v526_v23, %v477_v55  ;;  %1847 = vrot.lane.b32.xlu1 %v2526_v52, %s2256_s9  ;;  %v633_v7 = vmax.f32 %v617_v62, 0.0  ;;  %1365 = vmatprep.mubr.bf16.mxu1 %v2152_v47 }
 0x19d   : > { %v481_v58 = vpop.f32.mrf.mxu0  ;;  %v2640_v54 = vand.u32 127, %v644_v50 }
 0x19e   : > { %v634_v59 = vmax.f32 %v618_v56, 0.0  ;;  %v619_v60 = vadd.f32 %v590_v25, %v555_v57  ;;  %1832 = vrot.lane.b32.xlu0 %v2522_v49, %s2257_s8  ;;  %v556_v8 = vmul.f32 %v531_v18, %v481_v58 }
 0x19f   : > { %v483_v63 = vpop.f32.mrf.mxu0  ;;  %vm978_vm1 = vcmp.lt.s32.totalorder %v2640_v54, 127  ;;  %vm698_vm2 = vcmp.lt.s32.totalorder %v2640_v54, 17  ;;  %vm909_vm3 = vcmp.lt.s32.totalorder %v2640_v54, 1  ;;  %vm769_vm4 = vcmp.lt.s32.totalorder %v2640_v54, 16 }
 0x1a0   : > { %1852 = vrot.lane.b32.xlu1 %v2526_v52, %s2257_s8  ;;  %v635_v3 = vmax.f32 %v619_v60, 0.0  ;;  %v2538_v5 = vpack.i.bf16 %v634_v59, %v632_v61  ;;  %v557_v9 = vmul.f32 %v531_v18, %v483_v63  ;;  %v620_v24 = vadd.f32 %v2518_v20, %v556_v8 }
 0x1a1   : > { %v485_v4 = vpop.f32.mrf.mxu0  ;;  %vm658_vm5 = vcmp.ge.s32.totalorder %v2640_v54, 16  ;;  %vm1118_vm0 = vcmp.lt.s32.totalorder %v2640_v54, 112 }
 0x1a2   : > { %v558_v6 = vmul.f32 %v2516_v19, %v485_v4  ;;  %1837 = vrot.lane.b32.xlu0 %v2522_v49, %s2258_s16  ;;  %v2547_v22 = vpack.i.bf16 %v635_v3, %v633_v7  ;;  %v621_v18 = vadd.f32 %v2518_v20, %v557_v9  ;;  %v2554_v26 = vpack.c.bf16 %v635_v3, %v633_v7  ;;  %vm2787_vm6 = vmpackc.low %vm658_vm5, %vm658_vm5 }
 0x1a3   : > { %v487_v10 = vpop.f32.mrf.mxu0  ;;  %v636_v20 = vmax.f32 %v620_v24, 0.0 }
 0x1a4   : > { %v622_v11 = vadd.f32 %v2520_v21, %v558_v6  ;;  %v559_v12 = vmul.f32 %v2516_v19, %v487_v10  ;;  %1857 = vrot.lane.b32.xlu1 %v2526_v52, %s2258_s16  ;;  %v2556_v19 = vpack.c.bf16 %v634_v59, %v632_v61  ;;  %v637_v32 = vmax.f32 %v621_v18, 0.0 }
 0x1a5   : > { %v491_v13 = vpop.f32.mrf.mxu0 }
 0x1a6   : > { %v623_v23 = vadd.f32 %v2520_v21, %v559_v12  ;;  %1842 = vrot.lane.b32.xlu0 %v2522_v49, %s2259_s11  ;;  %v638_v27 = vmax.f32 %v622_v11, 0.0  ;;  %v560_v21 = vmul.f32 %v2508_v14, %v491_v13 }
 0x1a7   : > { %v493_v25 = vpop.f32.mrf.mxu0 }
 0x1a8   : > { %1862 = vrot.lane.b32.xlu1 %v2526_v52, %s2259_s11  ;;  %v639_v28 = vmax.f32 %v623_v23, 0.0  ;;  %v561_v30 = vmul.f32 %v2508_v14, %v493_v25  ;;  %v624_v36 = vadd.f32 %v2512_v16, %v560_v21  ;;  %v2066_v38 = vpack.i.bf16 %v638_v27, %v636_v20 }
 0x1a9   : > { %v495_v29 = vpop.f32.mrf.mxu0  ;;  %v2576_v41 = vpack.c.bf16 %v638_v27, %v636_v20 }
 0x1aa   : > { %v562_v31 = vmul.f32 %v2510_v15, %v495_v29  ;;  %1867 = vrot.lane.b32.xlu0 %v2538_v5, %s2256_s9  ;;  %v2091_v37 = vpack.i.bf16 %v639_v28, %v637_v32  ;;  %v625_v14 = vadd.f32 %v2512_v16, %v561_v30  ;;  %v2574_v40 = vpack.c.bf16 %v639_v28, %v637_v32 }
 0x1ab   : > { %v497_v33 = vpop.f32.mrf.mxu0  ;;  %v640_v43 = vmax.f32 %v624_v36, 0.0 }
 0x1ac   : > { %v626_v34 = vadd.f32 %v2514_v17, %v562_v31  ;;  %v563_v35 = vmul.f32 %v2510_v15, %v497_v33  ;;  %1887 = vrot.lane.b32.xlu1 %v2547_v22, %s2256_s9  ;;  %v641_v44 = vmax.f32 %v625_v14, 0.0 }
 0x1ae   : > { %v627_v39 = vadd.f32 %v2514_v17, %v563_v35  ;;  %1872 = vrot.lane.b32.xlu0 %v2538_v5, %s2257_s8  ;;  %v642_v42 = vmax.f32 %v626_v34, 0.0 }
 0x1b0   : > { %v643_v15 = vmax.f32 %v627_v39, 0.0  ;;  %1892 = vrot.lane.b32.xlu1 %v2547_v22, %s2257_s8  ;;  %v2586_v45 = vpack.c.bf16 %v642_v42, %v640_v43  ;;  %v1946_v46 = vpack.i.bf16 %v642_v42, %v640_v43  ;;  %v2730_v42 = vadd.s32 128, %v2640_v54 }
 0x1b2   : > { %1877 = vrot.lane.b32.xlu0 %v2538_v5, %s2258_s16  ;;  %v2116_v16 = vpack.i.bf16 %v643_v15, %v641_v44  ;;  %v2584_v17 = vpack.c.bf16 %v643_v15, %v641_v44  ;;  %v648_v44 = vcvt.s32.f32 %v2730_v42 }
 0x1b4   : > { %1897 = vrot.lane.b32.xlu1 %v2547_v22, %s2258_s16  ;;  %v651_v50 = vmul.f32 0.0625, %v648_v44 }
 0x1b6   : > { %1882 = vrot.lane.b32.xlu0 %v2538_v5, %s2259_s11 }
 0x1b8   : > { %1902 = vrot.lane.b32.xlu1 %v2547_v22, %s2259_s11 }
 0x1ba   : > { %1907 = vrot.lane.b32.xlu0 %v2066_v38, %s2256_s9 }
 0x1bc   : > { %1927 = vrot.lane.b32.xlu1 %v2091_v37, %s2256_s9 }
 0x1be   : > { %1912 = vrot.lane.b32.xlu0 %v2066_v38, %s2257_s8 }
 0x1c0   : > { %1932 = vrot.lane.b32.xlu1 %v2091_v37, %s2257_s8 }
 0x1c2   : > { %1917 = vrot.lane.b32.xlu0 %v2066_v38, %s2258_s16 }
 0x1c4   : > { %1937 = vrot.lane.b32.xlu1 %v2091_v37, %s2258_s16 }
 0x1c6   : > { %1922 = vrot.lane.b32.xlu0 %v2066_v38, %s2259_s11 }
 0x1c8   : > { %1942 = vrot.lane.b32.xlu1 %v2091_v37, %s2259_s11 }
 0x1ca   : > { %1947 = vrot.lane.b32.xlu0 %v1946_v46, %s2256_s9 }
 0x1cc   : > { %1982 = vrot.lane.b32.xlu1 %v2116_v16, %s2256_s9 }
 0x1ce   : > { %1952 = vrot.lane.b32.xlu0 %v2066_v38, %s2260_s18 }
 0x1d0   : > { %1987 = vrot.lane.b32.xlu1 %v2091_v37, %s2260_s18 }
 0x1d2   : > { %1957 = vrot.lane.b32.xlu0 %v1946_v46, %s2257_s8 }
 0x1d4   : > { %1997 = vrot.lane.b32.xlu1 %v2091_v37, %s2261_s15 }
 0x1d6   : > { %1962 = vrot.lane.b32.xlu0 %v1946_v46, %s2258_s16 }
 0x1d8   : > { %2007 = vrot.lane.b32.xlu1 %v2116_v16, %s2257_s8  ;;  %s2264_s8 = smov [#allocation5]  }
 0x1da   : > { %1967 = vrot.lane.b32.xlu0 %v1946_v46, %s2259_s11 }
 0x1dc   : > { %2012 = vrot.lane.b32.xlu1 %v2116_v16, %s2258_s16  ;;  %s2189_s16 = sshll.u32 %s2264_s8, 4  ;;  %s2190_s16 = int_to_ptr.vmem [resolvable:$false] %s2189_s16 }
 0x1de   : > { %1972 = vrot.lane.b32.xlu0 %v1946_v46, %s2260_s18 }
 0x1e0   : > { %2017 = vrot.lane.b32.xlu1 %v2547_v22, %s2260_s18 }
 0x1e2   : > { %1977 = vrot.lane.b32.xlu0 %v1946_v46, %s2261_s15 }
 0x1e4   : > { %2027 = vrot.lane.b32.xlu1 %v2547_v22, %s2261_s15 }
 0x1e6   : > { %1992 = vrot.lane.b32.xlu0 %v2066_v38, %s2261_s15 }
 0x1e8   : > { %2037 = vrot.lane.b32.xlu1 %v2526_v52, %s2260_s18 }
 0x1ea   : > { %2002 = vrot.lane.b32.xlu0 %v2538_v5, %s2260_s18 }
 0x1ec   : > { %2047 = vrot.lane.b32.xlu1 %v2116_v16, %s2259_s11  ;;  %s2191_s11 = scalar_lea.vmem %s2190_s16, 512 }
 0x1ee   : > { %2022 = vrot.lane.b32.xlu0 %v2538_v5, %s2261_s15 }
 0x1f0   : > { %2052 = vrot.lane.b32.xlu1 %v2526_v52, %s2261_s15 }
 0x1f2   : > { %2032 = vrot.lane.b32.xlu0 %v2522_v49, %s2260_s18 }
 0x1f4   : > { %2072 = vrot.lane.b32.xlu1 %v2091_v37, %s2262_s20 }
 0x1f6   : > { %2042 = vrot.lane.b32.xlu0 %v2522_v49, %s2261_s15 }
 0x1f8   : > { %2082 = vrot.lane.b32.xlu1 %v2116_v16, %s2260_s18 }
 0x1fa   : > { %2057 = vrot.lane.b32.xlu0 %v1946_v46, %s2262_s20 }
 0x1fc   : > { %2087 = vrot.lane.b32.xlu1 %v2116_v16, %s2261_s15  ;;  %s1573_s15 = sshll.u32 %s2404_s17, 4 }
 0x1fe   : > { %2062 = vrot.lane.b32.xlu0 %v1946_v46, %s2263_s22 }
 0x200   : > { %2092 = vrot.lane.b32.xlu1 %v2091_v37, %s2263_s22 }
 0x202   : > { %2067 = vrot.lane.b32.xlu0 %v2066_v38, %s2262_s20 }
 0x204   : > { %2102 = vrot.lane.b32.xlu1 %v2547_v22, %s2262_s20 }
 0x206   : > { %2077 = vrot.lane.b32.xlu0 %v2066_v38, %s2263_s22 }
 0x208   : > { %2112 = vrot.lane.b32.xlu1 %v2116_v16, %s2262_s20 }
 0x20a   : > { %2097 = vrot.lane.b32.xlu0 %v2538_v5, %s2262_s20 }
 0x20c   : > { %v2630_v48 = vpop.permute.xlu0 %1827  ;;  %2117 = vrot.lane.b32.xlu1 %v2116_v16, %s2263_s22  ;;  %v647_v16 = vcvt.s32.f32 %v2640_v54 }
 0x20d   : > { %v1829_v33 = vunpack.i.l.bf16 %v2630_v48 }
 0x20e   : > { %v2633_v51 = vpop.permute.xlu1 %1847  ;;  %2107 = vrot.lane.b32.xlu0 %v2538_v5, %s2263_s22  ;;  %v650_v53 = vmul.f32 0.0625, %v647_v16 }
 0x210   : > { %v1833_v55 = vpop.permute.xlu0 %1832  ;;  %2122 = vrot.lane.b32.xlu1 %v2547_v22, %s2263_s22 }
 0x211   : > { %v1835_v57 = vunpack.i.h.bf16 %v1833_v55  ;;  %v1834_v58 = vunpack.i.l.bf16 %v1833_v55 }
 0x212   : > { %v1853_v56 = vpop.permute.xlu1 %1852  ;;  %2127 = vrot.lane.b32.xlu0 %v2522_v49, %s2262_s20 }
 0x213   : > { %v1855_v59 = vunpack.i.h.bf16 %v1853_v56  ;;  %v1854_v60 = vunpack.i.l.bf16 %v1853_v56 }
 0x214   : > { %v1838_v61 = vpop.permute.xlu0 %1837  ;;  %2132 = vrot.lane.b32.xlu1 %v2526_v52, %s2262_s20  ;;  %s1759_s20 = smul.u32 768, %s2328_s28 }
 0x215   : > { %v2651_v62 = vsel %vm978_vm1, %v1835_v57, %v1855_v59  ;;  %v2655_v63 = vsel %vm978_vm1, %v1855_v59, %v1835_v57  ;;  %v2659_v3 = vsel %vm978_vm1, %v1834_v58, %v1854_v60  ;;  %v2663_v4 = vsel %vm978_vm1, %v1854_v60, %v1834_v58 }
 0x216   : > { %v1858_v7 = vpop.permute.xlu1 %1857  ;;  %2137 = vrot.lane.b32.xlu0 %v2522_v49, %s2263_s22  ;;  %v1840_v8 = vunpack.i.h.bf16 %v1838_v61  ;;  %v1839_v9 = vunpack.i.l.bf16 %v1838_v61  ;;  %v653_v57 = vfloor.f32 %v651_v50  ;;  %v652_v58 = vfloor.f32 %v650_v53  ;;  %s3457_s12 = scalar_lea.hbm %s3512_s7, %s1759_s20 }
 0x217   : > { %v1860_v10 = vunpack.i.h.bf16 %v1858_v7  ;;  %v1859_v11 = vunpack.i.l.bf16 %v1858_v7  ;;  %s3462_s28 = scalar_lea.hbm %s3457_s12, 512 }
 0x218   : > { %v1843_v12 = vpop.permute.xlu0 %1842  ;;  %2142 = vrot.lane.b32.xlu1 %v2526_v52, %s2263_s22  ;;  %v655_v61 = vmul.f32 16.0, %v653_v57  ;;  %v654_v7 = vmul.f32 16.0, %v652_v58  ;;  %s296_s22 = scalar_lea.vmem [#allocation5], %s1573_s15 }
 0x219   : > { %v2676_v13 = vsel %vm698_vm2, %v1840_v8, %v1860_v10  ;;  %v2680_v22 = vsel %vm698_vm2, %v1860_v10, %v1840_v8  ;;  %v2684_v23 = vsel %vm698_vm2, %v1839_v9, %v1859_v11  ;;  %v2688_v49 = vsel %vm698_vm2, %v1859_v11, %v1839_v9  ;;  %s1491_s23 = sshll.u32 %s296_s22, 4  ;;  %s3459_s23 = int_to_ptr.vmem [resolvable:$true] %s1491_s23 }
 0x21a   : > { %v1863_v18 = vpop.permute.xlu1 %1862  ;;  %v1845_v25 = vunpack.i.h.bf16 %v1843_v12  ;;  %v1844_v27 = vunpack.i.l.bf16 %v1843_v12  ;;  %v1850_v9 = vunpack.i.h.bf16 %v2633_v51  ;;  %s2185_s9 = scalar_lea.vmem %s3459_s23, 256  ;;  %p2192_p5 = scmp.lt.s32.totalorder %s3459_s23, %s2190_s16 }
 0x21b   : > { %v1865_v28 = vunpack.i.h.bf16 %v1863_v18  ;;  %v1864_v21 = vunpack.i.l.bf16 %v1863_v18  ;;  %v2751_v18 = vsub.f32 %v648_v44, %v655_v61  ;;  %p2186_p11 = scmp.ne.s32.totalorder %s3459_s23, %s2185_s9  ;;  %p2193_p7 = scmp.lt.s32.totalorder %s2191_s11, %s2185_s9 }
 0x21c   : > { %v2695_v29 = vpop.permute.xlu0 %1867 }
 0x21d   : > { %v2699_v30 = vsel %vm909_vm3, %v1845_v25, %v1865_v28  ;;  %v2703_v31 = vsel %vm909_vm3, %v1865_v28, %v1845_v25  ;;  %v2707_v20 = vsel %vm909_vm3, %v1844_v27, %v1864_v21  ;;  %v2711_v32 = vsel %vm909_vm3, %v1864_v21, %v1844_v27  ;;  %p2187_p13 = pnand %p2186_p11, %p3569_p12  ;;  %p2194_p8 = por %p2193_p7, %p2192_p5 }
 0x21e   : > { %3524 = vst [vmem:[#allocation8_spill] sm:$0xff] %v2703_v31  ;;  %3525 = vst [vmem:[#allocation9_spill] sm:$0xff] %v2711_v32  ;;  %v2717_v35 = vpop.permute.xlu1 %1887  ;;  %v2753_v25 = vsub.f32 %v647_v16, %v654_v7  ;;  %v1830_v27 = vunpack.i.h.bf16 %v2630_v48  ;;  %v1849_v28 = vunpack.i.l.bf16 %v2633_v51  ;;  %v1870_v5 = vunpack.i.h.bf16 %v2695_v29 }
 0x21f   : > { %v1890_v44 = vunpack.i.h.bf16 %v2717_v35  ;;  %v1889_v16 = vunpack.i.l.bf16 %v2717_v35  ;;  %v1869_v32 = vunpack.i.l.bf16 %v2695_v29  ;;  %vm665_vm7 = vcmp.le.f32.partialorder %v2751_v18, 14.5  ;;  %p2188_p4 = pneg %p2187_p13 }
 0x220   : > { %v2719_v36 = vpop.permute.xlu0 %1872  ;;  %vm664_vm8 = vcmp.le.f32.partialorder %v2753_v25, 14.5  ;;  %vm663_vm9 = vcmp.ge.f32.partialorder %v2751_v18, 0.5  ;;  %vm662_vm10 = vcmp.ge.f32.partialorder %v2753_v25, 0.5  ;;  %vm2856_vm11 = vmpackc.low %vm665_vm7, %vm665_vm7 }
 0x221   : > { %v781_v29 = vsel %vm769_vm4, %v1890_v44, %v1870_v5  ;;  %vm2865_vm12 = vmpackc.low %vm664_vm8, %vm664_vm8  ;;  %p2195_p10 = pnand %p2194_p8, %p2188_p4 }
 0x222   : > { %v2721_v37 = vpop.permute.xlu1 %1892  ;;  %vm2873_vm13 = vmand %vm658_vm5, %vm662_vm10 }
 0x223   : > { %vm2900_vm14 = vmpackc.low %vm663_vm9, %vm663_vm9 }
 0x224   : > { %v2723_v38 = vpop.permute.xlu0 %1877  ;;  %vm2921_vm15 = vmpackc.low %vm2873_vm13, %vm2873_vm13 }
 0x226   : > { %v2725_v14 = vpop.permute.xlu1 %1897 }
 0x228   : > { %v2727_v39 = vpop.permute.xlu0 %1882 }
 0x22a   : > { %v2732_v15 = vpop.permute.xlu1 %1902 }
 0x22c   : > { %v1908_v43 = vpop.permute.xlu0 %1907 }
 0x22d   : > { %v1910_v21 = vunpack.i.h.bf16 %v1908_v43  ;;  %v1909_v50 = vunpack.i.l.bf16 %v1908_v43 }
 0x22e   : > { %v1928_v46 = vpop.permute.xlu1 %1927 }
 0x22f   : > { %v1930_v11 = vunpack.i.h.bf16 %v1928_v46  ;;  %v1929_v12 = vunpack.i.l.bf16 %v1928_v46  ;;  %v2760_v46 = vsel %vm769_vm4, %v1850_v9, %v1830_v27 }
 0x230   : > { %v2736_v47 = vpop.permute.xlu0 %1912 }
 0x231   : > { %v774_v7 = vsel %vm769_vm4, %v1909_v50, %v1929_v12  ;;  %v775_v48 = vsel %vm769_vm4, %v1910_v21, %v1930_v11 }
 0x232   : > { %v2738_v55 = vpop.permute.xlu1 %1932 }
 0x234   : > { %v2740_v56 = vpop.permute.xlu0 %1917 }
 0x236   : > { %v2742_v59 = vpop.permute.xlu1 %1937 }
 0x238   : > { %v2744_v60 = vpop.permute.xlu0 %1922 }
 0x23a   : > { %v2746_v8 = vpop.permute.xlu1 %1942 }
 0x23c   : > { %v1948_v10 = vpop.permute.xlu0 %1947 }
 0x23d   : > { %v1950_v57 = vunpack.i.h.bf16 %v1948_v10  ;;  %v1949_v58 = vunpack.i.l.bf16 %v1948_v10  ;;  %v2776_v10 = vsel %vm769_vm4, %v1849_v28, %v1829_v33 }
 0x23e   : > { %v1983_v53 = vpop.permute.xlu1 %1982 }
 0x23f   : > { %v1985_v0 = vunpack.i.h.bf16 %v1983_v53  ;;  %v1984_v34 = vunpack.i.l.bf16 %v1983_v53 }
 0x240   : > { %v2764_v61 = vpop.permute.xlu0 %1952 }
 0x241   : > { %v776_v51 = vsel %vm769_vm4, %v1949_v58, %v1984_v34  ;;  %v777_v43 = vsel %vm769_vm4, %v1950_v57, %v1985_v0  ;;  %v784_v52 = vsel %vm769_vm4, %v1984_v34, %v1949_v58  ;;  %v785_v24 = vsel %vm769_vm4, %v1985_v0, %v1950_v57 }
 0x242   : > { %v2778_v53 = vpop.permute.xlu1 %1987  ;;  %v1241_v35 = vpack.c.bf16 %v777_v43, %v776_v51  ;;  %v1588_v31 = vpack.c.bf16 %v785_v24, %v784_v52  ;;  %v770_v51 = vsel %vm769_vm4, %v1829_v33, %v1849_v28  ;;  %v783_v34 = vsel %vm769_vm4, %v1930_v11, %v1910_v21 }
 0x243   : > { %v782_v0 = vsel %vm769_vm4, %v1929_v12, %v1909_v50  ;;  %v1239_v58 = vpack.c.bf16 %v775_v48, %v774_v7  ;;  %v771_v43 = vsel %vm769_vm4, %v1830_v27, %v1850_v9  ;;  %v772_v24 = vsel %vm769_vm4, %v1869_v32, %v1889_v16 }
 0x244   : > { %v1958_v57 = vpop.permute.xlu0 %1957  ;;  %1333 = vmatprep.subr.bf16.mxu1 %v1241_v35  ;;  %v773_v52 = vsel %vm769_vm4, %v1870_v5, %v1890_v44  ;;  %v780_v33 = vsel %vm769_vm4, %v1889_v16, %v1869_v32  ;;  %v1935_v9 = vunpack.i.h.bf16 %v2738_v55  ;;  %v1591_v12 = vpack.c.bf16 %v783_v34, %v782_v0 }
 0x245   : > { %1589 = vmatpush1.bf16.msk.msra.mxu1 %vm2787_vm6, %v1588_v31  ;;  %v1597_v31 = vpack.c.bf16 %v2760_v46, %v2776_v10  ;;  %v1235_v27 = vpack.c.bf16 %v771_v43, %v770_v51  ;;  %v1875_v28 = vunpack.i.h.bf16 %v2719_v36  ;;  %v1915_v5 = vunpack.i.h.bf16 %v2736_v47 }
 0x246   : > { %v2814_v11 = vpop.permute.xlu1 %1997  ;;  %1335 = vmatprep.subr.bf16.mxu1 %v1239_v58  ;;  %v1934_v32 = vunpack.i.l.bf16 %v2738_v55  ;;  %v1237_v50 = vpack.c.bf16 %v773_v52, %v772_v24  ;;  %v1594_v44 = vpack.c.bf16 %v781_v29, %v780_v33  ;;  %v1874_v16 = vunpack.i.l.bf16 %v2719_v36 }
 0x247   : > { %v1895_v7 = vunpack.i.h.bf16 %v2721_v37  ;;  %v1914_v35 = vunpack.i.l.bf16 %v2736_v47  ;;  %v2833_v55 = vsel %vm978_vm1, %v1915_v5, %v1935_v9  ;;  %v1960_v34 = vunpack.i.h.bf16 %v1958_v57 }
 0x248   : > { %v1963_v21 = vpop.permute.xlu0 %1962  ;;  %v1959_v0 = vunpack.i.l.bf16 %v1958_v57  ;;  %v992_v24 = vsel %vm978_vm1, %v1935_v9, %v1915_v5  ;;  %v1940_v29 = vunpack.i.h.bf16 %v2742_v59  ;;  %v1939_v47 = vunpack.i.l.bf16 %v2742_v59 }
 0x249   : > { %1592 = vmatpush1.bf16.msk.msra.mxu1 %vm2787_vm6, %v1591_v12  ;;  %v991_v52 = vsel %vm978_vm1, %v1934_v32, %v1914_v35  ;;  %v1920_v5 = vunpack.i.h.bf16 %v2740_v56 }
 0x24a   : > { %v2008_v51 = vpop.permute.xlu1 %2007  ;;  %1337 = vmatprep.subr.bf16.mxu1 %v1237_v50 }
 0x24b   : > { %v2010_v58 = vunpack.i.h.bf16 %v2008_v51  ;;  %v2009_v43 = vunpack.i.l.bf16 %v2008_v51  ;;  %v1919_v51 = vunpack.i.l.bf16 %v2740_v56  ;;  %v712_v56 = vsel %vm698_vm2, %v1940_v29, %v1920_v5 }
 0x24c   : > { %v2841_v33 = vpop.permute.xlu0 %1967 }
 0x24d   : > { %v986_v12 = vsel %vm978_vm1, %v1960_v34, %v2010_v58  ;;  %v994_v57 = vsel %vm978_vm1, %v2010_v58, %v1960_v34  ;;  %v985_v50 = vsel %vm978_vm1, %v1959_v0, %v2009_v43  ;;  %v993_v9 = vsel %vm978_vm1, %v2009_v43, %v1959_v0  ;;  %1595 = vmatpush1.bf16.msk.msra.mxu1 %vm2787_vm6, %v1594_v44 }
 0x24e   : > { %v1672_v34 = vpack.c.bf16 %v994_v57, %v993_v9  ;;  %v1675_v58 = vpack.c.bf16 %v986_v12, %v985_v50  ;;  %v2013_v10 = vpop.permute.xlu1 %2012  ;;  %1339 = vmatprep.subr.bf16.mxu1 %v1235_v27  ;;  %v1965_v0 = vunpack.i.h.bf16 %v1963_v21  ;;  %v1964_v43 = vunpack.i.l.bf16 %v1963_v21 }
 0x24f   : > { %v2015_v46 = vunpack.i.h.bf16 %v2013_v10  ;;  %v2014_v48 = vunpack.i.l.bf16 %v2013_v10  ;;  %v983_v27 = vsel %vm978_vm1, %v1914_v35, %v1934_v32  ;;  %v1678_v12 = vpack.c.bf16 %v992_v24, %v991_v52 }
 0x250   : > { %v704_v57 = vsel %vm698_vm2, %v1920_v5, %v1940_v29  ;;  %v703_v21 = vsel %vm698_vm2, %v1919_v51, %v1939_v47  ;;  %v2883_v50 = vpop.permute.xlu0 %1972  ;;  %1673 = vmatprep.subr.msk.bf16.mxu0 %vm2856_vm11, %v1672_v34  ;;  %v3536_v52 = vunpack.i.l.bf16 %v2721_v37 }
 0x251   : > { %v706_v10 = vsel %vm698_vm2, %v1965_v0, %v2015_v46  ;;  %v714_v9 = vsel %vm698_vm2, %v2015_v46, %v1965_v0  ;;  %v705_v32 = vsel %vm698_vm2, %v1964_v43, %v2014_v48  ;;  %v713_v35 = vsel %vm698_vm2, %v2014_v48, %v1964_v43  ;;  %1598 = vmatpush1.bf16.msk.msra.mxu1 %vm2787_vm6, %v1597_v31 }
 0x252   : > { %v990_v46 = vsel %vm978_vm1, %v1895_v7, %v1875_v28  ;;  %v989_v6 = vsel %vm978_vm1, %v3536_v52, %v1874_v16  ;;  %v1600_v31 = vpack.c.bf16 %v706_v10, %v705_v32  ;;  %v1603_v48 = vpack.c.bf16 %v714_v9, %v713_v35  ;;  %1676 = vmatpush1.bf16.msk.msra.mxu0 %vm2865_vm12, %v1675_v58  ;;  %v2916_v34 = vpop.permute.xlu1 %2017 }
 0x253   : > { %v982_v43 = vsel %vm978_vm1, %v1875_v28, %v1895_v7  ;;  %v1880_v10 = vunpack.i.h.bf16 %v2723_v38  ;;  %v1879_v9 = vunpack.i.l.bf16 %v2723_v38  ;;  %1679 = vmatprep.subr.msk.bf16.mxu0 %vm2856_vm11, %v1678_v12  ;;  %v1681_v58 = vpack.c.bf16 %v2833_v55, %v983_v27 }
 0x254   : > { %v711_v32 = vsel %vm698_vm2, %v1939_v47, %v1919_v51  ;;  %v1606_v35 = vpack.c.bf16 %v704_v57, %v703_v21  ;;  %v2938_v52 = vpop.permute.xlu0 %1977  ;;  %1601 = vmatprep.subr.msk.bf16.mxu1 %vm2900_vm14, %v1600_v31  ;;  %v3539_v28 = vunpack.i.l.bf16 %v2721_v37  ;;  %v1684_v7 = vpack.c.bf16 %v990_v46, %v989_v6 }
 0x255   : > { %v3540_v55 = vunpack.i.h.bf16 %v2725_v14  ;;  %v3541_v47 = vunpack.i.l.bf16 %v2725_v14  ;;  %1604 = vmatpush1.bf16.msk.msra.mxu1 %vm2921_vm15, %v1603_v48  ;;  %v1609_v37 = vpack.c.bf16 %v712_v56, %v711_v32  ;;  %v1905_v6 = vunpack.i.h.bf16 %v2732_v15 }
 0x256   : > { %v981_v38 = vsel %vm978_vm1, %v1874_v16, %v3539_v28  ;;  %1682 = vmatpush1.bf16.msk.msra.mxu0 %vm2865_vm12, %v1681_v58  ;;  %v2960_v36 = vpop.permute.xlu1 %2027  ;;  %1607 = vmatprep.subr.msk.bf16.mxu1 %vm2900_vm14, %v1606_v35  ;;  %v1904_v31 = vunpack.i.l.bf16 %v2732_v15  ;;  %v1945_v56 = vunpack.i.h.bf16 %v2746_v8  ;;  %v1944_v32 = vunpack.i.l.bf16 %v2746_v8  ;;  %vm3064_vm1 = vmpackc.low %vm662_vm10, %vm662_vm10 }
 0x257   : > { %v702_v29 = vsel %vm698_vm2, %v1880_v10, %v3540_v55  ;;  %v701_v5 = vsel %vm698_vm2, %v1879_v9, %v3541_v47  ;;  %1685 = vmatprep.subr.msk.bf16.mxu0 %vm2856_vm11, %v1684_v7  ;;  %v1687_v16 = vpack.c.bf16 %v982_v43, %v981_v38  ;;  %v3542_v51 = vmov %v3540_v55  ;;  %vm3195_vm10 = vmand %vm658_vm5, %vm664_vm8 }
 0x258   : > { %v710_v27 = vsel %vm698_vm2, %v3542_v51, %v1880_v10  ;;  %v3543_v12 = vmov %v3541_v47  ;;  %v1612_v21 = vpack.c.bf16 %v702_v29, %v701_v5  ;;  %v2974_v46 = vpop.permute.xlu0 %1992  ;;  %v1885_v43 = vunpack.i.h.bf16 %v2727_v39  ;;  %vm3227_vm5 = vmpackc.low %vm3195_vm10, %vm3195_vm10 }
 0x259   : > { %v709_v57 = vsel %vm698_vm2, %v3543_v12, %v1879_v9  ;;  %1610 = vmatpush1.bf16.msk.msra.mxu1 %vm2921_vm15, %v1609_v37  ;;  %v3544_v10 = vpack.c.bf16 %v2655_v63, %v2663_v4  ;;  %v1884_v9 = vunpack.i.l.bf16 %v2727_v39  ;;  %v3545_v8 = vpack.c.bf16 %v2651_v62, %v2659_v3 }
 0x25a   : > { %1688 = vmatpush1.bf16.msk.msra.mxu0 %vm2865_vm12, %v1687_v16  ;;  %v2982_v48 = vpop.permute.xlu1 %2037  ;;  %1613 = vmatprep.subr.msk.bf16.mxu1 %vm2900_vm14, %v1612_v21  ;;  %v1615_v14 = vpack.c.bf16 %v710_v27, %v709_v57  ;;  %v2997_v58 = vsel %vm909_vm3, %v1885_v43, %v1905_v6  ;;  %v3005_v63 = vsel %vm909_vm3, %v1905_v6, %v1885_v43  ;;  %v1925_v38 = vunpack.i.h.bf16 %v2744_v60 }
 0x25b   : > { %1691 = vmatprep.subr.msk.bf16.mxu0 %vm2856_vm11, %v3544_v10  ;;  %v3009_v4 = vsel %vm909_vm3, %v1884_v9, %v1904_v31  ;;  %v3013_v39 = vsel %vm909_vm3, %v1904_v31, %v1884_v9  ;;  %v3546_v28 = vpack.c.bf16 %v2676_v13, %v2684_v23  ;;  %v1924_v7 = vunpack.i.l.bf16 %v2744_v60 }
 0x25c   : > { %v2993_v15 = vpop.permute.xlu0 %2002  ;;  %v1990_v55 = vunpack.i.h.bf16 %v2778_v53  ;;  %v1989_v29 = vunpack.i.l.bf16 %v2778_v53  ;;  %v1970_v62 = vunpack.i.h.bf16 %v2841_v33  ;;  %v1969_v3 = vunpack.i.l.bf16 %v2841_v33 }
 0x25d   : > { %1616 = vmatpush1.bf16.msk.msra.mxu1 %vm2921_vm15, %v1615_v14  ;;  %v915_v23 = vsel %vm909_vm3, %v1925_v38, %v1945_v56  ;;  %v914_v60 = vsel %vm909_vm3, %v1924_v7, %v1944_v32  ;;  %v1955_v37 = vunpack.i.h.bf16 %v2764_v61  ;;  %v1954_v53 = vunpack.i.l.bf16 %v2764_v61 }
 0x25e   : > { %1694 = vmatpush1.bf16.msk.msra.mxu0 %vm2865_vm12, %v3545_v8  ;;  %v2048_v35 = vpop.permute.xlu1 %2047  ;;  %1619 = vmatprep.subr.msk.bf16.mxu1 %vm2900_vm14, %v3546_v28  ;;  %v1995_v6 = vunpack.i.h.bf16 %v2974_v46  ;;  %v1994_v31 = vunpack.i.l.bf16 %v2974_v46  ;;  %v1630_v43 = vpack.c.bf16 %v915_v23, %v914_v60  ;;  %vm838_vm2 = vcmp.lt.s32.totalorder %v2640_v54, 15 }
 0x25f   : > { %1384 = vmatprep.subr.bf16.mxu0 %v2584_v17  ;;  %v2050_v47 = vunpack.i.h.bf16 %v2048_v35  ;;  %v2049_v5 = vunpack.i.l.bf16 %v2048_v35  ;;  %v3547_v17 = vpack.c.bf16 %v2680_v22, %v2688_v49  ;;  %v923_v22 = vsel %vm909_vm3, %v1945_v56, %v1925_v38 }
 0x260   : > { %v3033_v13 = vpop.permute.xlu0 %2022  ;;  %v922_v49 = vsel %vm909_vm3, %v1944_v32, %v1924_v7  ;;  %v3075_v21 = vsel %vm1118_vm0, %v1954_v53, %v1989_v29  ;;  %v3091_v10 = vsel %vm1118_vm0, %v1989_v29, %v1954_v53  ;;  %v2000_v46 = vunpack.i.h.bf16 %v2814_v11 }
 0x261   : > { %1622 = vmatpush1.bf16.msk.msra.mxu1 %vm2921_vm15, %v3547_v17  ;;  %v917_v33 = vsel %vm909_vm3, %v1970_v62, %v2050_v47  ;;  %v925_v16 = vsel %vm909_vm3, %v2050_v47, %v1970_v62  ;;  %v916_v51 = vsel %vm909_vm3, %v1969_v3, %v2049_v5  ;;  %v924_v27 = vsel %vm909_vm3, %v2049_v5, %v1969_v3 }
 0x262   : > { %1385 = vmatpush1.bf16.msra.mxu0 %v2586_v45  ;;  %v3055_v61 = vpop.permute.xlu1 %2052  ;;  %v1624_v12 = vpack.c.bf16 %v917_v33, %v916_v51  ;;  %v1627_v57 = vpack.c.bf16 %v925_v16, %v924_v27  ;;  %v3071_v45 = vsel %vm1118_vm0, %v1955_v37, %v1990_v55  ;;  %vm661_vm3 = vcmp.lt.s32.totalorder %v2730_v42, 240  ;;  %v2150_v42 = vld [vmem:[%s3511_s6] ss:$20 sps:$4 sm:$0xff]  }
 0x263   : > { %1386 = vmatprep.subr.bf16.mxu0 %v2574_v40  ;;  %v3087_v40 = vsel %vm1118_vm0, %v1990_v55, %v1955_v37  ;;  %v1999_v9 = vunpack.i.l.bf16 %v2814_v11  ;;  %v1636_v32 = vpack.c.bf16 %v2997_v58, %v3009_v4  ;;  %v1639_v8 = vpack.c.bf16 %v3005_v63, %v3013_v39  ;;  %vm3172_vm4 = vmpackc.low %vm661_vm3, %vm661_vm3 }
 0x264   : > { %v3079_v14 = vpop.permute.xlu0 %2032  ;;  %1625 = vmatprep.subr.msk.bf16.mxu1 %vm2900_vm14, %v1624_v12  ;;  %v1633_v35 = vpack.c.bf16 %v923_v22, %v922_v49  ;;  %v1286_v28 = vpack.c.bf16 %v3071_v45, %v3075_v21  ;;  %v3122_v63 = vsel %vm838_vm2, %v2000_v46, %v1995_v6  ;;  %v1699_v39 = vpack.c.bf16 %v3087_v40, %v3091_v10  ;;  %vm3308_vm13 = vmand %vm661_vm3, %vm663_vm9 }
 0x265   : > { %1628 = vmatpush2.bf16.msk.msra.mxu1 %vm3064_vm1, %v1627_v57  ;;  %v3110_v11 = vsel %vm838_vm2, %v1994_v31, %v1999_v9  ;;  %v3118_v58 = vsel %vm838_vm2, %v1999_v9, %v1994_v31  ;;  %v1975_v38 = vunpack.i.h.bf16 %v2883_v50  ;;  %v1974_v7 = vunpack.i.l.bf16 %v2883_v50  ;;  %vm3332_vm9 = vmpackc.low %vm3308_vm13, %vm3308_vm13 }
 0x266   : > { %1387 = vmatpush1.bf16.msra.mxu0 %v2576_v41  ;;  %v3098_v56 = vpop.permute.xlu1 %2072  ;;  %1631 = vmatprep.subr.msk.bf16.mxu1 %vm2900_vm14, %v1630_v43  ;;  %v3114_v41 = vsel %vm838_vm2, %v1995_v6, %v2000_v46  ;;  %v2004_v55 = vunpack.i.l.bf16 %v2993_v15  ;;  %v2020_v29 = vunpack.i.h.bf16 %v2916_v34  ;;  %v2019_v62 = vunpack.i.l.bf16 %v2916_v34 }
 0x267   : > { %1388 = vmatprep.subr.bf16.mxu0 %v2554_v26  ;;  %v1980_v3 = vunpack.i.h.bf16 %v2938_v52  ;;  %v1979_v47 = vunpack.i.l.bf16 %v2938_v52  ;;  %v2030_v5 = vunpack.i.h.bf16 %v2960_v36  ;;  %v2029_v50 = vunpack.i.l.bf16 %v2960_v36 }
 0x268   : > { %v3125_v4 = vpop.permute.xlu0 %2042  ;;  %v1654_v23 = vpack.c.bf16 %v3114_v41, %v3110_v11  ;;  %v1657_v34 = vpack.c.bf16 %v3122_v63, %v3118_v58  ;;  %v2040_v52 = vunpack.i.h.bf16 %v2982_v48  ;;  %v2005_v60 = vunpack.i.h.bf16 %v2993_v15 }
 0x269   : > { %1634 = vmatpush2.bf16.msk.msra.mxu1 %vm3064_vm1, %v1633_v35  ;;  %v2039_v36 = vunpack.i.l.bf16 %v2982_v48  ;;  %v3155_v17 = vsel %vm1118_vm0, %v2004_v55, %v2019_v62  ;;  %v2025_v33 = vunpack.i.h.bf16 %v3033_v13  ;;  %v2024_v16 = vunpack.i.l.bf16 %v3033_v13 }
 0x26a   : > { %1389 = vmatpush1.bf16.msra.mxu0 %v2556_v19  ;;  %v2083_v26 = vpop.permute.xlu1 %2082  ;;  %1637 = vmatprep.subr.msk.bf16.mxu1 %vm2900_vm14, %v1636_v32  ;;  %v3552_v6 = vpack.c.bf16 %v2699_v30, %v2707_v20  ;;  %v1129_v31 = vsel %vm1118_vm0, %v2019_v62, %v2004_v55  ;;  %v1130_v43 = vsel %vm1118_vm0, %v2020_v29, %v2005_v60  ;;  %v2035_v46 = vunpack.i.h.bf16 %v3079_v14  ;;  %v3556_v55 = vld [vmem:[#allocation9_spill] sm:$0xff] }
 0x26b   : > { %v2085_v37 = vunpack.i.h.bf16 %v2083_v26  ;;  %v2084_v19 = vunpack.i.l.bf16 %v2083_v26  ;;  %1390 = vmatprep.subr.bf16.mxu0 %v2532_v1  ;;  %v2034_v9 = vunpack.i.l.bf16 %v3079_v14  ;;  %vm1047_vm6 = vcmp.lt.s32.totalorder %v2640_v54, 113 }
 0x26c   : > { %v3150_v53 = vpop.permute.xlu0 %2057  ;;  %v2045_v25 = vunpack.i.h.bf16 %v3125_v4  ;;  %v1702_v26 = vpack.c.bf16 %v1130_v43, %v1129_v31  ;;  %vm1187_vm8 = vcmp.lt.s32.totalorder %v2640_v54, 111  ;;  %v2074_v45 = vunpack.i.l.bf16 %v3098_v56  ;;  %v2156_v54 = vld [vmem:[%s3511_s6 + $0x10] ss:$20 sps:$4 sm:$0xff]  }
 0x26d   : > { %v1126_v51 = vsel %vm1118_vm0, %v1975_v38, %v2085_v37  ;;  %v1134_v15 = vsel %vm1118_vm0, %v2085_v37, %v1975_v38  ;;  %v1125_v1 = vsel %vm1118_vm0, %v1974_v7, %v2084_v19  ;;  %v1133_v48 = vsel %vm1118_vm0, %v2084_v19, %v1974_v7  ;;  %1640 = vmatpush2.bf16.msk.msra.mxu1 %vm3064_vm1, %v1639_v8  ;;  %v3555_v7 = vld [vmem:[#allocation8_spill] sm:$0xff] }
 0x26e   : > { %v2088_v27 = vpop.permute.xlu1 %2087  ;;  %v1288_v22 = vpack.c.bf16 %v1126_v51, %v1125_v1  ;;  %v1696_v49 = vpack.c.bf16 %v1134_v15, %v1133_v48  ;;  %1391 = vmatpush1.bf16.msra.mxu0 %v2534_v2  ;;  %1643 = vmatprep.subr.msk.bf16.mxu1 %vm2900_vm14, %v3552_v6  ;;  %v2044_v8 = vunpack.i.l.bf16 %v3125_v4  ;;  %v3557_v62 = vpack.c.bf16 %v3555_v7, %v3556_v55  ;;  %vm3350_vm14 = vmand %vm661_vm3, %vm665_vm7 }
 0x26f   : > { %v2090_v12 = vunpack.i.h.bf16 %v2088_v27  ;;  %v2089_v57 = vunpack.i.l.bf16 %v2088_v27  ;;  %v841_v37 = vsel %vm838_vm2, %v2024_v16, %v2029_v50  ;;  %v842_v4 = vsel %vm838_vm2, %v2025_v33, %v2030_v5  ;;  %vm3384_vm7 = vmpackc.low %vm3350_vm14, %vm3350_vm14 }
 0x270   : > { %v3188_v32 = vpop.permute.xlu0 %2062  ;;  %1697 = vmatprep.subr.msk.bf16.mxu0 %vm3172_vm4, %v1696_v49  ;;  %v849_v51 = vsel %vm838_vm2, %v2029_v50, %v2024_v16  ;;  %v2054_v15 = vunpack.i.l.bf16 %v3055_v61  ;;  %v1119_v50 = vsel %vm1118_vm0, %v2034_v9, %v2039_v36  ;;  %v1660_v48 = vpack.c.bf16 %v842_v4, %v841_v37 }
 0x271   : > { %v846_v30 = vsel %vm838_vm2, %v1980_v3, %v2090_v12  ;;  %v854_v20 = vsel %vm838_vm2, %v2090_v12, %v1980_v3  ;;  %v845_v24 = vsel %vm838_vm2, %v1979_v47, %v2089_v57  ;;  %v853_v14 = vsel %vm838_vm2, %v2089_v57, %v1979_v47  ;;  %1646 = vmatpush2.bf16.msk.msra.mxu1 %vm3064_vm1, %v3557_v62 }
 0x272   : > { %v1648_v35 = vpack.c.bf16 %v846_v30, %v845_v24  ;;  %v1651_v38 = vpack.c.bf16 %v854_v20, %v853_v14  ;;  %v3216_v3 = vpop.permute.xlu1 %2092  ;;  %v1122_v47 = vsel %vm1118_vm0, %v2005_v60, %v2020_v29  ;;  %1393 = vmatpush2.bf16.msra.mxu0 %v1288_v22  ;;  %v850_v29 = vsel %vm838_vm2, %v2030_v5, %v2025_v33 }
 0x273   : > { %v2055_v60 = vunpack.i.h.bf16 %v3055_v61  ;;  %1700 = vmatprep.subr.msk.bf16.mxu0 %vm3172_vm4, %v1699_v39  ;;  %v1120_v5 = vsel %vm1118_vm0, %v2035_v46, %v2040_v52  ;;  %v1127_v33 = vsel %vm1118_vm0, %v2039_v36, %v2034_v9  ;;  %v1128_v61 = vsel %vm1118_vm0, %v2040_v52, %v2035_v46 }
 0x274   : > { %v2068_v1 = vpop.permute.xlu0 %2067  ;;  %1649 = vmatprep.subr.msk.bf16.mxu1 %vm2856_vm11, %v1648_v35  ;;  %v839_v40 = vsel %vm838_vm2, %v2044_v8, %v2054_v15  ;;  %v3258_v39 = vsel %vm838_vm2, %v2054_v15, %v2044_v8  ;;  %v1284_v52 = vpack.c.bf16 %v1122_v47, %v3155_v17  ;;  %v1663_v49 = vpack.c.bf16 %v850_v29, %v849_v51 }
 0x275   : > { %v840_v10 = vsel %vm838_vm2, %v2045_v25, %v2055_v60  ;;  %v3262_v16 = vsel %vm838_vm2, %v2055_v60, %v2045_v25  ;;  %1652 = vmatpush2.bf16.msk.msra.mxu1 %vm3227_vm5, %v1651_v38  ;;  %v2070_v27 = vunpack.i.h.bf16 %v2068_v1  ;;  %v2069_v22 = vunpack.i.l.bf16 %v2068_v1 }
 0x276   : > { %v3266_v36 = vpop.permute.xlu1 %2102  ;;  %1395 = vmatpush2.bf16.msra.mxu0 %v1286_v28  ;;  %v1282_v12 = vpack.c.bf16 %v1120_v5, %v1119_v50  ;;  %v1705_v57 = vpack.c.bf16 %v1128_v61, %v1127_v33  ;;  %1655 = vmatprep.subr.msk.bf16.mxu1 %vm2856_vm11, %v1654_v23  ;;  %v2075_v6 = vunpack.i.h.bf16 %v3098_v56  ;;  %v1666_v21 = vpack.c.bf16 %v840_v10, %v839_v40 }
 0x277   : > { %1703 = vmatprep.subr.msk.bf16.mxu0 %vm3172_vm4, %v1702_v26  ;;  %v1669_v28 = vpack.c.bf16 %v3262_v16, %v3258_v39  ;;  %v2060_v31 = vunpack.i.h.bf16 %v3150_v53  ;;  %v2059_v11 = vunpack.i.l.bf16 %v3150_v53  ;;  %v2065_v41 = vunpack.i.h.bf16 %v3188_v32 }
 0x278   : > { %v2078_v17 = vpop.permute.xlu0 %2077  ;;  %v2064_v23 = vunpack.i.l.bf16 %v3188_v32  ;;  %v2095_v56 = vunpack.i.h.bf16 %v3216_v3  ;;  %v3296_v46 = vsel %vm1047_vm6, %v2069_v22, %v2074_v45  ;;  %v3300_v53 = vsel %vm1047_vm6, %v2070_v27, %v2075_v6 }
 0x279   : > { %1658 = vmatpush2.bf16.msk.msra.mxu1 %vm3227_vm5, %v1657_v34  ;;  %v1060_v9 = vsel %vm1047_vm6, %v2074_v45, %v2069_v22  ;;  %v1061_v63 = vsel %vm1047_vm6, %v2075_v6, %v2070_v27  ;;  %v2079_v34 = vunpack.i.l.bf16 %v2078_v17  ;;  %v2094_v20 = vunpack.i.l.bf16 %v3216_v3 }
 0x27a   : > { %v2113_v43 = vpop.permute.xlu1 %2112  ;;  %1397 = vmatpush2.bf16.msra.mxu0 %v1284_v52  ;;  %1661 = vmatprep.subr.msk.bf16.mxu1 %vm2856_vm11, %v1660_v48  ;;  %v2080_v24 = vunpack.i.h.bf16 %v2078_v17  ;;  %v1714_v62 = vpack.c.bf16 %v1061_v63, %v1060_v9  ;;  %v1717_v3 = vpack.c.bf16 %v3300_v53, %v3296_v46  ;;  %v2105_v37 = vunpack.i.h.bf16 %v3266_v36 }
 0x27b   : > { %v2115_v32 = vunpack.i.h.bf16 %v2113_v43  ;;  %v2114_v2 = vunpack.i.l.bf16 %v2113_v43  ;;  %1706 = vmatprep.subr.msk.bf16.mxu0 %vm3172_vm4, %v1705_v57  ;;  %v2104_v4 = vunpack.i.l.bf16 %v3266_v36  ;;  %v3342_v51 = vsel %vm1187_vm8, %v2079_v34, %v2094_v20 }
 0x27c   : > { %v2098_v30 = vpop.permute.xlu0 %2097  ;;  %v1193_v1 = vsel %vm1187_vm8, %v2080_v24, %v2095_v56  ;;  %v1200_v50 = vsel %vm1187_vm8, %v2094_v20, %v2079_v34  ;;  %v1201_v5 = vsel %vm1187_vm8, %v2095_v56, %v2080_v24 }
 0x27d   : > { %v2100_v14 = vunpack.i.h.bf16 %v2098_v30  ;;  %v2099_v25 = vunpack.i.l.bf16 %v2098_v30  ;;  %v1055_v8 = vsel %vm1047_vm6, %v2060_v31, %v2115_v32  ;;  %v1063_v35 = vsel %vm1047_vm6, %v2115_v32, %v2060_v31  ;;  %1664 = vmatpush2.bf16.msk.msra.mxu1 %vm3227_vm5, %v1663_v49 }
 0x27e   : > { %v1054_v38 = vsel %vm1047_vm6, %v2059_v11, %v2114_v2  ;;  %v1062_v7 = vsel %vm1047_vm6, %v2114_v2, %v2059_v11  ;;  %v2118_v13 = vpop.permute.xlu1 %2117  ;;  %1399 = vmatpush2.bf16.msra.mxu0 %v1282_v12  ;;  %1667 = vmatprep.subr.msk.bf16.mxu1 %vm2856_vm11, %v1666_v21  ;;  %v1738_v57 = vpack.c.bf16 %v1201_v5, %v1200_v50  ;;  %vm1329_vm11 = vcmask 523264  }
 0x27f   : > { %v1708_v47 = vpack.c.bf16 %v1063_v35, %v1062_v7  ;;  %v1711_v26 = vpack.c.bf16 %v1055_v8, %v1054_v38  ;;  %v2120_v29 = vunpack.i.h.bf16 %v2118_v13  ;;  %v2119_v59 = vunpack.i.l.bf16 %v2118_v13 }
 0x280   : > { %v2108_v60 = vpop.permute.xlu0 %2107  ;;  %v1058_v18 = vsel %vm1047_vm6, %v2104_v4, %v2099_v25  ;;  %v1059_v33 = vsel %vm1047_vm6, %v2105_v37, %v2100_v14  ;;  %v1741_v17 = vpack.c.bf16 %v1193_v1, %v3342_v51  ;;  %v1050_v6 = vsel %vm1047_vm6, %v2099_v25, %v2104_v4  ;;  %v2153_v4 = vld [vmem:[%s3511_s6 + $0x8] ss:$20 sps:$4 sm:$0xff]  }
 0x281   : > { %1709 = vmatprep.subr.msk.bf16.mxu0 %vm3332_vm9, %v1708_v47  ;;  %v1195_v61 = vsel %vm1187_vm8, %v2065_v41, %v2120_v29  ;;  %v1203_v40 = vsel %vm1187_vm8, %v2120_v29, %v2065_v41  ;;  %1670 = vmatpush2.bf16.msk.msra.mxu1 %vm3227_vm5, %v1669_v28  ;;  %v1194_v39 = vsel %vm1187_vm8, %v2064_v23, %v2119_v59  ;;  %v2110_v22 = vunpack.i.h.bf16 %v2108_v60 }
 0x282   : > { %v2123_v10 = vpop.permute.xlu1 %2122  ;;  %v1202_v16 = vsel %vm1187_vm8, %v2119_v59, %v2064_v23  ;;  %1712 = vmatpush2.bf16.msk.msra.mxu0 %vm3064_vm1, %v1711_v26  ;;  %v1735_v27 = vpack.c.bf16 %v1195_v61, %v1194_v39  ;;  %v2109_v49 = vunpack.i.l.bf16 %v2108_v60  ;;  %v1051_v45 = vsel %vm1047_vm6, %v2100_v14, %v2105_v37 }
 0x283   : > { %v2125_v36 = vunpack.i.h.bf16 %v2123_v10  ;;  %v2124_v52 = vunpack.i.l.bf16 %v2123_v10  ;;  %v1732_v19 = vpack.c.bf16 %v1203_v40, %v1202_v16  ;;  %1715 = vmatprep.subr.msk.bf16.mxu0 %vm3332_vm9, %v1714_v62  ;;  %v1720_v21 = vpack.c.bf16 %v1059_v33, %v1058_v18 }
 0x284   : > { %v2128_v12 = vpop.permute.xlu0 %2127  ;;  %1366 = vmatmul.mubr.bf16.vlgmr.msra.gmra.mxu1 %v2150_v42  ;;  %v3568_v41 = vmov 0   ;;  %v1723_v53 = vpack.c.bf16 %v1051_v45, %v1050_v6 }
 0x285   : > { %v1199_v28 = vsel %vm1187_vm8, %v2125_v36, %v2110_v22  ;;  %v1198_v31 = vsel %vm1187_vm8, %v2124_v52, %v2109_v49  ;;  %1733 = vmatprep.subr.msk.bf16.mxu1 %vm3384_vm7, %v1732_v19  ;;  %1451 = vmatprep.mubr.bf16.mxu1 %v3568_v41  ;;  %v2130_v23 = vunpack.i.h.bf16 %v2128_v12  ;;  %v2129_v43 = vunpack.i.l.bf16 %v2128_v12 }
 0x286   : > { %v2133_v11 = vpop.permute.xlu1 %2132  ;;  %1718 = vmatpush2.bf16.msk.msra.mxu0 %vm3064_vm1, %v1717_v3  ;;  %1736 = vmatpush1.bf16.msk.msra.mxu1 %vm2865_vm12, %v1735_v27  ;;  %v1191_v9 = vsel %vm1187_vm8, %v2110_v22, %v2125_v36  ;;  %v1190_v58 = vsel %vm1187_vm8, %v2109_v49, %v2124_v52  ;;  %v1744_v20 = vpack.c.bf16 %v1199_v28, %v1198_v31 }
 0x287   : > { %v2135_v56 = vunpack.i.h.bf16 %v2133_v11  ;;  %v2134_v46 = vunpack.i.l.bf16 %v2133_v11  ;;  %1721 = vmatprep.subr.msk.bf16.mxu0 %vm3332_vm9, %v1720_v21  ;;  %1739 = vmatprep.subr.msk.bf16.mxu1 %vm3384_vm7, %v1738_v57  ;;  %v1747_v13 = vpack.c.bf16 %v1191_v9, %v1190_v58 }
 0x288   : > { %v2138_v63 = vpop.permute.xlu0 %2137 }
 0x289   : > { %v1049_v34 = vsel %vm1047_vm6, %v2130_v23, %v2135_v56  ;;  %v1057_v32 = vsel %vm1047_vm6, %v2135_v56, %v2130_v23  ;;  %v1048_v2 = vsel %vm1047_vm6, %v2129_v43, %v2134_v46  ;;  %v1056_v30 = vsel %vm1047_vm6, %v2134_v46, %v2129_v43 }
 0x28a   : > { %v1726_v24 = vpack.c.bf16 %v1057_v32, %v1056_v30  ;;  %v1729_v14 = vpack.c.bf16 %v1049_v34, %v1048_v2  ;;  %v2143_v25 = vpop.permute.xlu1 %2142  ;;  %v2140_v8 = vunpack.i.h.bf16 %v2138_v63  ;;  %v2139_v35 = vunpack.i.l.bf16 %v2138_v63  ;;  %1724 = vmatpush2.bf16.msk.msra.mxu0 %vm3064_vm1, %v1723_v53  ;;  %1742 = vmatpush1.bf16.msk.msra.mxu1 %vm2865_vm12, %v1741_v17 }
 0x28b   : > { %v2145_v38 = vunpack.i.h.bf16 %v2143_v25  ;;  %v2144_v7 = vunpack.i.l.bf16 %v2143_v25  ;;  %1745 = vmatprep.subr.msk.bf16.mxu1 %vm3384_vm7, %v1744_v20 }
 0x28c   : > { %1727 = vmatprep.subr.msk.bf16.mxu0 %vm3332_vm9, %v1726_v24 }
 0x28d   : > { %v1189_v62 = vsel %vm1187_vm8, %v2140_v8, %v2145_v38  ;;  %v1197_v3 = vsel %vm1187_vm8, %v2145_v38, %v2140_v8  ;;  %v1188_v47 = vsel %vm1187_vm8, %v2139_v35, %v2144_v7  ;;  %v1196_v26 = vsel %vm1187_vm8, %v2144_v7, %v2139_v35 }
 0x28e   : > { %v1750_v37 = vpack.c.bf16 %v1197_v3, %v1196_v26  ;;  %v1753_v51 = vpack.c.bf16 %v1189_v62, %v1188_v47  ;;  %1730 = vmatpush2.bf16.msk.msra.mxu0 %vm3064_vm1, %v1729_v14  ;;  %1748 = vmatpush1.bf16.msk.msra.mxu1 %vm2865_vm12, %v1747_v13 }
 0x290   : > { %1751 = vmatprep.subr.msk.bf16.mxu1 %vm3384_vm7, %v1750_v37 }
 0x291   : > { %1409 = vmatmul.mubr.bf16.vlgmr.msra.gmra.mxu0 %v2153_v4 }
 0x292   : > { %1754 = vmatpush1.bf16.msk.msra.mxu1 %vm2865_vm12, %v1753_v51 }
 0x295   : > { %1755 = vmatmul.mubr.msk.bf16.vlgmr.msra.gmra.mxu1 %vm1329_vm11, %v2156_v54 }
 0x344   : > { %v1367_v0 = vpop.f32.mrf.mxu1 }
 0x346   : > { %v1369_v55 = vpop.f32.mrf.mxu1 }
 0x348   : > { %v1371_v29 = vpop.f32.mrf.mxu1 }
 0x34a   : > { %v1373_v15 = vpop.f32.mrf.mxu1 }
 0x351   : > { %v1410_v60 = vpop.f32.mrf.mxu0 }
 0x352   : > { %v1411_v59 = vadd.f32 %v1410_v60, %v1367_v0 }
 0x353   : > { %v1412_v1 = vpop.f32.mrf.mxu0 }
 0x354   : > { %v1413_v42 = vadd.f32 %v1412_v1, %v1369_v55 }
 0x355   : > { %v1414_v50 = vpop.f32.mrf.mxu0  ;;  %v1453_v5 = vpop.f32.mrf.mxu1 }
 0x356   : > { %v1454_v61 = vadd.f32 %v1453_v5, %v1411_v59  ;;  %v1415_v10 = vadd.f32 %v1414_v50, %v1371_v29 }
 0x357   : > { %v1416_v18 = vpop.f32.mrf.mxu0  ;;  %v1455_v33 = vpop.f32.mrf.mxu1 }
 0x358   : > { %v1456_v44 = vadd.f32 %v1455_v33, %v1413_v42  ;;  %v1417_v39 = vadd.f32 %v1416_v18, %v1373_v15 }
 0x359   : > { %v1457_v40 = vpop.f32.mrf.mxu1 }
 0x35a   : > { %v1762_v16 = vpack.c.bf16 %v1456_v44, %v1454_v61  ;;  %v1458_v52 = vadd.f32 %v1457_v40, %v1415_v10 }
 0x35b   : > { %v1459_v36 = vpop.f32.mrf.mxu1 }
 0x35c   : > { %1474 = vst [vmem:[%s296_s22] sm:$0xff] %v1762_v16  ;;  %v1460_v48 = vadd.f32 %v1459_v36, %v1417_v39 }
 0x35e   : > { %v1763_v19 = vpack.c.bf16 %v1460_v48, %v1458_v52 }
 0x360   : > { %1475 = vst [vmem:[%s296_s22 + $0x8] sm:$0xff] %v1763_v19 }
 0x361   : > { %2198 = shalt.err (!%p2195_p10)
}
 0x362   : > { %s2211_s18 = scalar_lea.hbm %s3457_s12, 768  ;;  %s2203_s22 = scalar_lea.hbm %s3512_s7, 1536 }
 0x363   : > { %p2200_p0 = scmp.ne.s32.totalorder %s3462_s28, %s2211_s18  ;;  %p2204_p1 = scmp.lt.s32.totalorder %s3462_s28, %s3512_s7 }
 0x364   : > { %p2205_p3 = scmp.lt.s32.totalorder %s2203_s22, %s2211_s18 }
 0x365   : > { %p2201_p2 = pnand %p2200_p0, %p3569_p12 }
 0x366   : > { %p2206_p6 = por %p2205_p3, %p2204_p1 }
 0x367   : > { %p2202_p9 = pneg %p2201_p2 }
 0x369   : > { %p2207_p11 = pnand %p2206_p6, %p2202_p9 }
 0x36b   : > { %2210 = shalt.err (!%p2207_p11)
}
 0x36c   : > { %s2265_s9 = smov 128   ;;  %s2266_s12 = smov 8  }
 0x36d   : > { %1767 = dma.vmem_to_hbm [thread:$0]  (%p3569_p12), %s3459_s23, 256, %s3462_s28, %s1477_s21, %s2265_s9, %s2265_s9, %s2266_s12  }
 0x36e PF: > { %s1506_s8 = sand.u32 1, %s2238_s24   ;;  %p3570_p13 = scmp.ne.s32.totalorder %s3521_s14, 0 }
 0x36f   : > { %p3571_p4 = scmp.ge.s32.totalorder %s2250_s27, 2  ;;  %s1507_s16 = scalar_lea.sflag [#allocation4], %s1506_s8 }
 0x371   : > { %p1774_p5 = pnand %p3571_p4, %p3570_p13 }
 0x373   : > { %p1775_p7 = pneg %p1774_p5 }
 0x375   : > { %2233 = dma.done.wait (%p1775_p7), %s1507_s16, 256  }
 0x376   : > { %2235 = vsyncadd (%p1775_p7), %s1507_s16, 4294967040  ;;  %p20_p8 = scmp.ge.s32.totalorder %s2332_s30, 4   ;;  %s3572_s24 = smov %s2242_s25 }
 0x377   : > { %s3573_s25 = smov %s2246_s26  ;;  %s3574_s26 = smov %s2344_s10 }
 0x378   : > { %s3575_s27 = smov %s2332_s30  ;;  %22 = sbr.rel (!%p20_p8) target bundleno = 5 (0x5), region = 93 }
 0x37d   :  { %1512 = vsyncpa [#allocation3], 1 }
 0x37e   :  { %1514 = vsyncpa [#allocation3 + $0x1], 1 }
 0x37f   :  { %1515 = vsyncpa [#allocation4], 1 }
 0x380   :  { %1517 = vsyncpa [#allocation4 + $0x1], 1 }

</bundles_post_ra>
